<compile_context>
chip_gen: v7x
topology: tpu7x:2x2x1
jax: 0.10.0
libtpu: 0.0.40
codegen_flags: <defaults>
</compile_context>

<pallas_src>
import functools

import jax
import jax.numpy as jnp
from jax.experimental import pallas as pl
from jax.experimental.pallas import tpu as pltpu


# --------------------------------------------------------------------------
# small helpers
# --------------------------------------------------------------------------
def _round_up(x, m):
    return ((x + m - 1) // m) * m


def _sigmoid(x):
    # logistic via tanh: numerically stable and rides the EUP tanh unit
    return 0.5 * (jnp.tanh(0.5 * x) + 1.0)


def _masked_softmax(logits, valid_s):
    """Softmax over the last axis; padded key positions (>= valid_s) masked."""
    total_s = logits.shape[-1]
    if valid_s < total_s:
        col = jax.lax.broadcasted_iota(jnp.int32, logits.shape, logits.ndim - 1)
        logits = jnp.where(col < valid_s, logits, -jnp.inf)
    m = jnp.max(logits, axis=-1, keepdims=True)
    e = jnp.exp(logits - m)
    inv = pl.reciprocal(jnp.sum(e, axis=-1, keepdims=True), approx=False)
    return e * inv


def _tpu_info():
    """Best-effort VMEM capacity (bytes) + TensorCores per chip."""
    vmem_bytes = 128 * 1024 * 1024
    num_cores = 1
    try:
        info = pltpu.get_tpu_info()
        for name in ("vmem_capacity_bytes", "vmem_bytes", "vmem_size_bytes"):
            v = getattr(info, name, None)
            if v:
                vmem_bytes = int(v)
                break
        for name in ("num_cores", "tensorcores_per_chip", "cores_per_chip",
                     "num_tensorcores"):
            v = getattr(info, name, None)
            if v:
                num_cores = int(v)
                break
    except Exception:
        pass
    return vmem_bytes, num_cores


def _default_mxu_dtype():
    """bf16 MXU operands on v6e/v7x (halves DMA bytes, 918 TF/s MXU); f32 else."""
    try:
        kind = jax.devices()[0].device_kind.lower()
        if any(t in kind for t in ("v6", "v7", "trillium")):
            return jnp.bfloat16
    except Exception:
        pass
    return jnp.float32


def _choose_tiling(B, S_pad, H, elem_bytes):
    """Generation-aware batch tile, grid size, padded batch and VMEM limit."""
    vmem_bytes, num_cores = _tpu_info()
    budget = int(vmem_bytes * 0.45)          # headroom for compiler scratch
    # weight stacks (~11*H^2 + biases/vectors), double-buffered by the pipeline
    weight_bytes = 2 * (11 * H * H * elem_bytes + 10 * H * 4)
    # per-batch-row live footprint:
    #   static+dynamic slabs (double-buffered) + f32 temporaries u/eng/product
    #   + probs/att rows + gate/ctx vectors
    per_row = (2 * 2 * S_pad * H * elem_bytes
               + 3 * S_pad * H * 4
               + 6 * S_pad * 4
               + 12 * H * 4)
    cap_rows = (budget - weight_bytes) // max(per_row, 1)
    cap_rows = max(8, (cap_rows // 8) * 8)

    b8 = _round_up(max(B, 1), 8)
    tb = min(cap_rows, b8)
    if num_cores >= 2 and b8 >= 16:
        # force >= 2 batch tiles so the "parallel" axis shards across both TCs
        tb = min(tb, _round_up((b8 + 1) // 2, 8))
    tb = max(8, (tb // 8) * 8)
    b_pad = _round_up(b8, tb)
    nb = b_pad // tb

    needed = weight_bytes + tb * per_row
    vmem_limit = int(min(vmem_bytes * 0.8, max(2 * needed, 32 * 1024 * 1024)))
    return tb, nb, b_pad, vmem_limit


# --------------------------------------------------------------------------
# kernels
# --------------------------------------------------------------------------
def _pointer_kernel_fused(sd_ref, x_ref, h_ref,
                          wih_t_ref, whh_t_ref, b_ih_ref, b_hh_ref,
                          wa_sd_t_ref, wa_h_t_ref, va_ref,
                          wp_s_t_ref, wp_c_t_ref, vp_ref,
                          probs_ref, hh_ref, *, valid_s):
    """Fast path: H % 128 == 0 (lane-aligned gate / static slices)."""
    tb, S, H2 = sd_ref.shape
    H = H2 // 2
    f32 = jnp.float32

    x = x_ref[...]                     # (tb, H) decoder input
    h = h_ref[...]                     # (tb, H) previous hidden

    # ---- GRU step: two fused N=3H matmuls, lane-aligned gate slices --------
    gi = jnp.dot(x, wih_t_ref[...], preferred_element_type=f32) + b_ih_ref[...]
    gh = jnp.dot(h, whh_t_ref[...], preferred_element_type=f32) + b_hh_ref[...]
    r = _sigmoid(gi[:, 0:H] + gh[:, 0:H])
    z = _sigmoid(gi[:, H:2 * H] + gh[:, H:2 * H])
    n = jnp.tanh(gi[:, 2 * H:3 * H] + r * gh[:, 2 * H:3 * H])
    h_new = (1.0 - z) * n + z * h.astype(f32)            # (tb, H) f32
    hh_ref[...] = h_new
    h_mm = h_new.astype(x.dtype)
    # drop_rnn / drop_hh are identity in eval mode.

    # ---- Attention: single (tb*S, 2H) @ (2H, H) matmul ----------------------
    sd = sd_ref[...]                                      # (tb, S, 2H)
    sd2 = sd.reshape(tb * S, 2 * H)
    u = jnp.dot(sd2, wa_sd_t_ref[...], preferred_element_type=f32)
    h_term = jnp.dot(h_mm, wa_h_t_ref[...], preferred_element_type=f32)
    u = jnp.tanh(u.reshape(tb, S, H) + h_term[:, None, :])

    att_logits = jnp.sum(u * va_ref[...][None, :, :], axis=-1)   # (tb, S) VPU
    att = _masked_softmax(att_logits, valid_s)                   # (tb, S)

    # context: reuse the resident slab, accumulate in f32 (no full-slab upcast)
    sta = sd[:, :, 0:H]
    ctx = jnp.sum(att.astype(sta.dtype)[:, :, None] * sta, axis=1, dtype=f32)

    # ---- Pointer logits ------------------------------------------------------
    c_term = jnp.dot(ctx.astype(x.dtype), wp_c_t_ref[...],
                     preferred_element_type=f32)                 # (tb, H)
    eng = jnp.dot(sd2[:, 0:H], wp_s_t_ref[...], preferred_element_type=f32)
    eng = jnp.tanh(eng.reshape(tb, S, H) + c_term[:, None, :])
    probs_ref[...] = jnp.sum(eng * vp_ref[...][None, :, :], axis=-1)


def _pointer_kernel_split(static_ref, dynamic_ref, x_ref, h_ref,
                          wih_t_ref, whh_t_ref, bih_ref, bhh_ref,
                          wa_t_ref, va_ref, wp_t_ref, vp_ref,
                          probs_ref, hh_ref, *, valid_s):
    """Fallback path for H % 128 != 0: pre-split per-gate / per-part weights."""
    tb, S, H = static_ref.shape
    f32 = jnp.float32

    x = x_ref[...]
    h = h_ref[...]

    gi_r = jnp.dot(x, wih_t_ref[0], preferred_element_type=f32) + bih_ref[0]
    gi_z = jnp.dot(x, wih_t_ref[1], preferred_element_type=f32) + bih_ref[1]
    gi_n = jnp.dot(x, wih_t_ref[2], preferred_element_type=f32) + bih_ref[2]
    gh_r = jnp.dot(h, whh_t_ref[0], preferred_element_type=f32) + bhh_ref[0]
    gh_z = jnp.dot(h, whh_t_ref[1], preferred_element_type=f32) + bhh_ref[1]
    gh_n = jnp.dot(h, whh_t_ref[2], preferred_element_type=f32) + bhh_ref[2]
    r = _sigmoid(gi_r + gh_r)
    z = _sigmoid(gi_z + gh_z)
    n = jnp.tanh(gi_n + r * gh_n)
    h_new = (1.0 - z) * n + z * h.astype(f32)
    hh_ref[...] = h_new
    h_mm = h_new.astype(x.dtype)

    sta = static_ref[...]                                 # (tb, S, H)
    dyn = dynamic_ref[...]
    sta2 = sta.reshape(tb * S, H)
    dyn2 = dyn.reshape(tb * S, H)
    u = (jnp.dot(sta2, wa_t_ref[0], preferred_element_type=f32)
         + jnp.dot(dyn2, wa_t_ref[1], preferred_element_type=f32))
    h_term = jnp.dot(h_mm, wa_t_ref[2], preferred_element_type=f32)
    u = jnp.tanh(u.reshape(tb, S, H) + h_term[:, None, :])

    att_logits = jnp.sum(u * va_ref[...][None, :, :], axis=-1)
    att = _masked_softmax(att_logits, valid_s)

    ctx = jnp.sum(att.astype(sta.dtype)[:, :, None] * sta, axis=1, dtype=f32)

    c_term = jnp.dot(ctx.astype(x.dtype), wp_t_ref[1], preferred_element_type=f32)
    eng = jnp.dot(sta2, wp_t_ref[0], preferred_element_type=f32)
    eng = jnp.tanh(eng.reshape(tb, S, H) + c_term[:, None, :])
    probs_ref[...] = jnp.sum(eng * vp_ref[...][None, :, :], axis=-1)


# --------------------------------------------------------------------------
# wrapper
# --------------------------------------------------------------------------
def pointer_forward(static_hidden, dynamic_hidden, decoder_hidden, last_hh,
                    params, *, mxu_dtype=None):
    """Pallas implementation of Pointer.forward (num_layers=1, eval mode)."""
    if mxu_dtype is None:
        mxu_dtype = _default_mxu_dtype()
    B, H, S = static_hidden.shape
    f32 = jnp.float32
    elem_bytes = jnp.dtype(mxu_dtype).itemsize

    # ------ padding / layout plumbing (wrapper-side, free for the kernel) ----
    s8 = _round_up(S, 8)
    s128 = _round_up(S, 128)
    # lane-dense probs stores + free reshapes when cheap; at minimum sublane-pad
    S_pad = s128 if (s128 - S) * 8 <= S else s8
    tb, nb, B_pad, vmem_limit = _choose_tiling(B, S_pad, H, elem_bytes)

    pad3 = ((0, B_pad - B), (0, S_pad - S), (0, 0))
    static_t = jnp.pad(jnp.transpose(static_hidden, (0, 2, 1)).astype(mxu_dtype),
                       pad3)                              # (B_pad, S_pad, H)
    dynamic_t = jnp.pad(jnp.transpose(dynamic_hidden, (0, 2, 1)).astype(mxu_dtype),
                        pad3)
    x = jnp.pad(decoder_hidden[:, :, 0].astype(mxu_dtype),
                ((0, B_pad - B), (0, 0)))                 # (B_pad, H)
    h0 = jnp.pad(last_hh[0].astype(mxu_dtype), ((0, B_pad - B), (0, 0)))

    wih, whh = params["gru_wih"], params["gru_whh"]       # (3H, H)
    bih, bhh = params["gru_bih"], params["gru_bhh"]       # (3H,)
    wa = params["attn_W"][0]                              # (H, 3H)
    va = params["attn_v"][0].astype(f32)                  # (1, H)
    wp = params["ptr_W"][0]                               # (H, 2H)
    vp = params["ptr_v"][0].astype(f32)                   # (1, H)

    fused = (H % 128 == 0)
    out_shape = (jax.ShapeDtypeStruct((B_pad, S_pad), f32),
                 jax.ShapeDtypeStruct((B_pad, H), f32))
    out_specs = (pl.BlockSpec((tb, S_pad), lambda b: (b, 0)),
                 pl.BlockSpec((tb, H), lambda b: (b, 0)))

    if fused:
        # concat static|dynamic on the lane axis: one K=2H attention matmul
        sd = jnp.concatenate([static_t, dynamic_t], axis=-1)     # (B_pad,S_pad,2H)
        wih_t = wih.T.astype(mxu_dtype)                          # (H, 3H)
        whh_t = whh.T.astype(mxu_dtype)
        b_ih = bih.reshape(1, 3 * H).astype(f32)
        b_hh = bhh.reshape(1, 3 * H).astype(f32)
        wa_sd_t = wa[:, :2 * H].T.astype(mxu_dtype)              # (2H, H)
        wa_h_t = wa[:, 2 * H:].T.astype(mxu_dtype)               # (H, H)
        wp_s_t = wp[:, :H].T.astype(mxu_dtype)                   # (H, H)
        wp_c_t = wp[:, H:].T.astype(mxu_dtype)                   # (H, H)
        kernel = functools.partial(_pointer_kernel_fused, valid_s=S)
        in_specs = [
            pl.BlockSpec((tb, S_pad, 2 * H), lambda b: (b, 0, 0)),
            pl.BlockSpec((tb, H), lambda b: (b, 0)),
            pl.BlockSpec((tb, H), lambda b: (b, 0)),
            pl.BlockSpec((H, 3 * H), lambda b: (0, 0)),
            pl.BlockSpec((H, 3 * H), lambda b: (0, 0)),
            pl.BlockSpec((1, 3 * H), lambda b: (0, 0)),
            pl.BlockSpec((1, 3 * H), lambda b: (0, 0)),
            pl.BlockSpec((2 * H, H), lambda b: (0, 0)),
            pl.BlockSpec((H, H), lambda b: (0, 0)),
            pl.BlockSpec((1, H), lambda b: (0, 0)),
            pl.BlockSpec((H, H), lambda b: (0, 0)),
            pl.BlockSpec((H, H), lambda b: (0, 0)),
            pl.BlockSpec((1, H), lambda b: (0, 0)),
        ]
        args = (sd, x, h0, wih_t, whh_t, b_ih, b_hh,
                wa_sd_t, wa_h_t, va, wp_s_t, wp_c_t, vp)
    else:
        # pre-split per-gate / per-part weights so the kernel never slices on
        # lane-unaligned H / 2H / 3H boundaries
        wih_t = jnp.stack([wih[0:H].T, wih[H:2 * H].T, wih[2 * H:].T]
                          ).astype(mxu_dtype)                    # (3, H, H)
        whh_t = jnp.stack([whh[0:H].T, whh[H:2 * H].T, whh[2 * H:].T]
                          ).astype(mxu_dtype)
        b_ih = bih.reshape(3, 1, H).astype(f32)
        b_hh = bhh.reshape(3, 1, H).astype(f32)
        wa_t = jnp.stack([wa[:, 0:H].T, wa[:, H:2 * H].T, wa[:, 2 * H:].T]
                         ).astype(mxu_dtype)                     # (3, H, H)
        wp_t = jnp.stack([wp[:, :H].T, wp[:, H:].T]).astype(mxu_dtype)  # (2,H,H)
        kernel = functools.partial(_pointer_kernel_split, valid_s=S)
        in_specs = [
            pl.BlockSpec((tb, S_pad, H), lambda b: (b, 0, 0)),
            pl.BlockSpec((tb, S_pad, H), lambda b: (b, 0, 0)),
            pl.BlockSpec((tb, H), lambda b: (b, 0)),
            pl.BlockSpec((tb, H), lambda b: (b, 0)),
            pl.BlockSpec((3, H, H), lambda b: (0, 0, 0)),
            pl.BlockSpec((3, H, H), lambda b: (0, 0, 0)),
            pl.BlockSpec((3, 1, H), lambda b: (0, 0, 0)),
            pl.BlockSpec((3, 1, H), lambda b: (0, 0, 0)),
            pl.BlockSpec((3, H, H), lambda b: (0, 0, 0)),
            pl.BlockSpec((1, H), lambda b: (0, 0)),
            pl.BlockSpec((2, H, H), lambda b: (0, 0, 0)),
            pl.BlockSpec((1, H), lambda b: (0, 0)),
        ]
        args = (static_t, dynamic_t, x, h0, wih_t, whh_t, b_ih, b_hh,
                wa_t, va, wp_t, vp)

    probs, hh = pl.pallas_call(
        kernel,
        out_shape=out_shape,
        grid_spec=pltpu.PrefetchScalarGridSpec(
            num_scalar_prefetch=0,
            grid=(nb,),
            in_specs=in_specs,
            out_specs=out_specs),
        compiler_params=pltpu.CompilerParams(
            dimension_semantics=("parallel",),       # batch tiles independent
            vmem_limit_bytes=vmem_limit),
    )(*args)

    # drop padded batch rows / key columns; last_hh shape (1, B, H)
    return probs[:B, :S], hh[None, :B, :]


# --------------------------------------------------------------------------
# pure-JAX reference (mirror of the PyTorch forward, eval mode)
# --------------------------------------------------------------------------
def pointer_reference(static_hidden, dynamic_hidden, decoder_hidden, last_hh, params):
    B, H, S = static_hidden.shape
    x = decoder_hidden[:, :, 0]
    h = last_hh[0]
    gi = x @ params["gru_wih"].T + params["gru_bih"]
    gh = h @ params["gru_whh"].T + params["gru_bhh"]
    r = jax.nn.sigmoid(gi[:, :H] + gh[:, :H])
    z = jax.nn.sigmoid(gi[:, H:2 * H] + gh[:, H:2 * H])
    n = jnp.tanh(gi[:, 2 * H:] + r * gh[:, 2 * H:])
    hn = (1.0 - z) * n + z * h                                     # (B, H)

    hidden = jnp.concatenate(
        [static_hidden, dynamic_hidden,
         jnp.broadcast_to(hn[:, :, None], (B, H, S))], axis=1)     # (B, 3H, S)
    wa, va = params["attn_W"][0], params["attn_v"][0]
    u = jnp.tanh(jnp.einsum("hk,bks->bhs", wa, hidden))
    att = jax.nn.softmax(jnp.einsum("oh,bhs->bos", va, u), axis=-1)  # (B,1,S)

    context = jnp.einsum("bos,bhs->boh", att, static_hidden)       # (B,1,H)
    context = jnp.broadcast_to(jnp.transpose(context, (0, 2, 1)), (B, H, S))
    energy = jnp.concatenate([static_hidden, context], axis=1)     # (B, 2H, S)
    wp, vp = params["ptr_W"][0], params["ptr_v"][0]
    probs = jnp.einsum(
        "oh,bhs->bos", vp, jnp.tanh(jnp.einsum("hk,bks->bhs", wp, energy)))[:, 0, :]
    return probs, hn[None]


def make_params(key, hidden_size):
    H = hidden_size
    ks = jax.random.split(key, 8)
    scale = 0.1
    return {
        # Pointer parameters (module declares zeros; use deterministic random init)
        "ptr_v": scale * jax.random.normal(ks[0], (1, 1, H), jnp.float32),
        "ptr_W": scale * jax.random.normal(ks[1], (1, H, 2 * H), jnp.float32),
        # Attention parameters
        "attn_v": scale * jax.random.normal(ks[2], (1, 1, H), jnp.float32),
        "attn_W": scale * jax.random.normal(ks[3], (1, H, 3 * H), jnp.float32),
        # GRU (num_layers=1): weight_ih_l0 (3H,H), weight_hh_l0 (3H,H), biases (3H,)
        "gru_wih": scale * jax.random.normal(ks[4], (3 * H, H), jnp.float32),
        "gru_whh": scale * jax.random.normal(ks[5], (3 * H, H), jnp.float32),
        "gru_bih": scale * jax.random.normal(ks[6], (3 * H,), jnp.float32),
        "gru_bhh": scale * jax.random.normal(ks[7], (3 * H,), jnp.float32),
    }


# --------------------------------------------------------------------------
# demo / correctness checks
# --------------------------------------------------------------------------
if __name__ == "__main__":
    root_key = jax.random.PRNGKey(0)

    def run_case(B, H, S, mxu_dtype, atol, rtol):
        key = jax.random.fold_in(root_key, 1_000_000 * B + 1_000 * H + S)
        kp, k1, k2, k3, k4 = jax.random.split(key, 5)
        params = make_params(kp, H)
        static_hidden = jax.random.normal(k1, (B, H, S), jnp.float32)
        dynamic_hidden = jax.random.normal(k2, (B, H, S), jnp.float32)
        decoder_hidden = jax.random.normal(k3, (B, H, 1), jnp.float32)
        last_hh = jax.random.normal(k4, (1, B, H), jnp.float32)

        fwd = jax.jit(functools.partial(pointer_forward, params=params,
                                        mxu_dtype=mxu_dtype))
        probs, new_hh = fwd(static_hidden, dynamic_hidden, decoder_hidden, last_hh)
        jax.block_until_ready((probs, new_hh))

        probs_ref, hh_ref = pointer_reference(
            static_hidden, dynamic_hidden, decoder_hidden, last_hh, params)
        assert probs.shape == (B, S) and new_hh.shape == (1, B, H)
        assert jnp.allclose(probs, probs_ref, atol=atol, rtol=rtol), \
            f"probs mismatch (H={H}, dtype={mxu_dtype})"
        assert jnp.allclose(new_hh, hh_ref, atol=atol, rtol=rtol), \
            f"hidden mismatch (H={H}, dtype={mxu_dtype})"

    # 1) fallback (H % 128 != 0) path, f32 operands, strict tolerance
    run_case(B=2, H=32, S=10, mxu_dtype=jnp.float32, atol=1e-4, rtol=1e-4)
    # 2) fused (H % 128 == 0) path, f32 operands, strict tolerance
    run_case(B=4, H=128, S=20, mxu_dtype=jnp.float32, atol=1e-4, rtol=1e-4)
    # 3) bf16 MXU-operand path (v6e/v7x default), loose tolerance
    run_case(B=4, H=128, S=20, mxu_dtype=jnp.bfloat16, atol=7e-2, rtol=5e-2)

    print("KERNEL_OK")
</pallas_src>

<mosaic_0001>
module attributes {stable_mosaic.version = 11 : i64} {
  func.func @_pointer_kernel_split(%arg0: i32, %arg1: memref<8x16x32xf32, #tpu.memory_space<vmem>>, %arg2: memref<8x16x32xf32, #tpu.memory_space<vmem>>, %arg3: memref<8x32xf32, #tpu.memory_space<vmem>>, %arg4: memref<8x32xf32, #tpu.memory_space<vmem>>, %arg5: memref<3x32x32xf32, #tpu.memory_space<vmem>>, %arg6: memref<3x32x32xf32, #tpu.memory_space<vmem>>, %arg7: memref<3x1x32xf32, #tpu.memory_space<vmem>>, %arg8: memref<3x1x32xf32, #tpu.memory_space<vmem>>, %arg9: memref<3x32x32xf32, #tpu.memory_space<vmem>>, %arg10: memref<1x32xf32, #tpu.memory_space<vmem>>, %arg11: memref<2x32x32xf32, #tpu.memory_space<vmem>>, %arg12: memref<1x32xf32, #tpu.memory_space<vmem>>, %arg13: memref<8x16xf32, #tpu.memory_space<vmem>>, %arg14: memref<8x32xf32, #tpu.memory_space<vmem>>) attributes {dimension_semantics = [#tpu.dimension_semantics<parallel>], iteration_bounds = array<i64: 1>, scalar_prefetch = 0 : i64, scratch_operands = 0 : i64, tpu.core_type = #tpu.core_type<tc>, window_params = [{transform_indices = @transform_0, window_bounds = array<i64: 8, 16, 32>}, {transform_indices = @transform_1, window_bounds = array<i64: 8, 16, 32>}, {transform_indices = @transform_2, window_bounds = array<i64: 8, 32>}, {transform_indices = @transform_3, window_bounds = array<i64: 8, 32>}, {pipeline_mode = #tpu.pipeline_mode<synchronous>, transform_indices = @transform_4, window_bounds = array<i64: 3, 32, 32>}, {pipeline_mode = #tpu.pipeline_mode<synchronous>, transform_indices = @transform_5, window_bounds = array<i64: 3, 32, 32>}, {pipeline_mode = #tpu.pipeline_mode<synchronous>, transform_indices = @transform_6, window_bounds = array<i64: 3, 1, 32>}, {pipeline_mode = #tpu.pipeline_mode<synchronous>, transform_indices = @transform_7, window_bounds = array<i64: 3, 1, 32>}, {pipeline_mode = #tpu.pipeline_mode<synchronous>, transform_indices = @transform_8, window_bounds = array<i64: 3, 32, 32>}, {pipeline_mode = #tpu.pipeline_mode<synchronous>, transform_indices = @transform_9, window_bounds = array<i64: 1, 32>}, {pipeline_mode = #tpu.pipeline_mode<synchronous>, transform_indices = @transform_10, window_bounds = array<i64: 2, 32, 32>}, {pipeline_mode = #tpu.pipeline_mode<synchronous>, transform_indices = @transform_11, window_bounds = array<i64: 1, 32>}, {transform_indices = @transform_12, window_bounds = array<i64: 8, 16>}, {transform_indices = @transform_13, window_bounds = array<i64: 8, 32>}]} {
    %c0 = arith.constant 0 : index
    %c0_0 = arith.constant 0 : index
    %0 = vector.load %arg3[%c0, %c0_0] : memref<8x32xf32, #tpu.memory_space<vmem>>, vector<8x32xf32>
    %c0_1 = arith.constant 0 : index
    %c0_2 = arith.constant 0 : index
    %1 = vector.load %arg4[%c0_1, %c0_2] : memref<8x32xf32, #tpu.memory_space<vmem>>, vector<8x32xf32>
    %c0_3 = arith.constant 0 : index
    %c0_4 = arith.constant 0 : index
    %c0_5 = arith.constant 0 : index
    %2 = vector.load %arg5[%c0_3, %c0_4, %c0_5] : memref<3x32x32xf32, #tpu.memory_space<vmem>>, vector<1x32x32xf32>
    %3 = vector.shape_cast %2 : vector<1x32x32xf32> to vector<32x32xf32>
    %cst = arith.constant dense<0.000000e+00> : vector<8x32xf32>
    %4 = tpu.matmul %0, %3, %cst {dimension_numbers = #tpu.dot_dimension_numbers<[1], [0], [0], [1], [0, 0, 1, 1], [], []>} : vector<8x32xf32>, vector<32x32xf32>, vector<8x32xf32> -> vector<8x32xf32>
    %c0_6 = arith.constant 0 : index
    %c0_7 = arith.constant 0 : index
    %c0_8 = arith.constant 0 : index
    %5 = vector.load %arg7[%c0_6, %c0_7, %c0_8] : memref<3x1x32xf32, #tpu.memory_space<vmem>>, vector<1x1x32xf32>
    %6 = vector.shape_cast %5 : vector<1x1x32xf32> to vector<1x32xf32>
    %7 = vector.broadcast %6 : vector<1x32xf32> to vector<8x32xf32>
    %8 = arith.addf %4, %7 : vector<8x32xf32>
    %c1 = arith.constant 1 : index
    %c0_9 = arith.constant 0 : index
    %c0_10 = arith.constant 0 : index
    %9 = vector.load %arg5[%c1, %c0_9, %c0_10] : memref<3x32x32xf32, #tpu.memory_space<vmem>>, vector<1x32x32xf32>
    %10 = vector.shape_cast %9 : vector<1x32x32xf32> to vector<32x32xf32>
    %cst_11 = arith.constant dense<0.000000e+00> : vector<8x32xf32>
    %11 = tpu.matmul %0, %10, %cst_11 {dimension_numbers = #tpu.dot_dimension_numbers<[1], [0], [0], [1], [0, 0, 1, 1], [], []>} : vector<8x32xf32>, vector<32x32xf32>, vector<8x32xf32> -> vector<8x32xf32>
    %c1_12 = arith.constant 1 : index
    %c0_13 = arith.constant 0 : index
    %c0_14 = arith.constant 0 : index
    %12 = vector.load %arg7[%c1_12, %c0_13, %c0_14] : memref<3x1x32xf32, #tpu.memory_space<vmem>>, vector<1x1x32xf32>
    %13 = vector.shape_cast %12 : vector<1x1x32xf32> to vector<1x32xf32>
    %14 = vector.broadcast %13 : vector<1x32xf32> to vector<8x32xf32>
    %15 = arith.addf %11, %14 : vector<8x32xf32>
    %c2 = arith.constant 2 : index
    %c0_15 = arith.constant 0 : index
    %c0_16 = arith.constant 0 : index
    %16 = vector.load %arg5[%c2, %c0_15, %c0_16] : memref<3x32x32xf32, #tpu.memory_space<vmem>>, vector<1x32x32xf32>
    %17 = vector.shape_cast %16 : vector<1x32x32xf32> to vector<32x32xf32>
    %cst_17 = arith.constant dense<0.000000e+00> : vector<8x32xf32>
    %18 = tpu.matmul %0, %17, %cst_17 {dimension_numbers = #tpu.dot_dimension_numbers<[1], [0], [0], [1], [0, 0, 1, 1], [], []>} : vector<8x32xf32>, vector<32x32xf32>, vector<8x32xf32> -> vector<8x32xf32>
    %c2_18 = arith.constant 2 : index
    %c0_19 = arith.constant 0 : index
    %c0_20 = arith.constant 0 : index
    %19 = vector.load %arg7[%c2_18, %c0_19, %c0_20] : memref<3x1x32xf32, #tpu.memory_space<vmem>>, vector<1x1x32xf32>
    %20 = vector.shape_cast %19 : vector<1x1x32xf32> to vector<1x32xf32>
    %21 = vector.broadcast %20 : vector<1x32xf32> to vector<8x32xf32>
    %22 = arith.addf %18, %21 : vector<8x32xf32>
    %c0_21 = arith.constant 0 : index
    %c0_22 = arith.constant 0 : index
    %c0_23 = arith.constant 0 : index
    %23 = vector.load %arg6[%c0_21, %c0_22, %c0_23] : memref<3x32x32xf32, #tpu.memory_space<vmem>>, vector<1x32x32xf32>
    %24 = vector.shape_cast %23 : vector<1x32x32xf32> to vector<32x32xf32>
    %cst_24 = arith.constant dense<0.000000e+00> : vector<8x32xf32>
    %25 = tpu.matmul %1, %24, %cst_24 {dimension_numbers = #tpu.dot_dimension_numbers<[1], [0], [0], [1], [0, 0, 1, 1], [], []>} : vector<8x32xf32>, vector<32x32xf32>, vector<8x32xf32> -> vector<8x32xf32>
    %c0_25 = arith.constant 0 : index
    %c0_26 = arith.constant 0 : index
    %c0_27 = arith.constant 0 : index
    %26 = vector.load %arg8[%c0_25, %c0_26, %c0_27] : memref<3x1x32xf32, #tpu.memory_space<vmem>>, vector<1x1x32xf32>
    %27 = vector.shape_cast %26 : vector<1x1x32xf32> to vector<1x32xf32>
    %28 = vector.broadcast %27 : vector<1x32xf32> to vector<8x32xf32>
    %29 = arith.addf %25, %28 : vector<8x32xf32>
    %c1_28 = arith.constant 1 : index
    %c0_29 = arith.constant 0 : index
    %c0_30 = arith.constant 0 : index
    %30 = vector.load %arg6[%c1_28, %c0_29, %c0_30] : memref<3x32x32xf32, #tpu.memory_space<vmem>>, vector<1x32x32xf32>
    %31 = vector.shape_cast %30 : vector<1x32x32xf32> to vector<32x32xf32>
    %cst_31 = arith.constant dense<0.000000e+00> : vector<8x32xf32>
    %32 = tpu.matmul %1, %31, %cst_31 {dimension_numbers = #tpu.dot_dimension_numbers<[1], [0], [0], [1], [0, 0, 1, 1], [], []>} : vector<8x32xf32>, vector<32x32xf32>, vector<8x32xf32> -> vector<8x32xf32>
    %c1_32 = arith.constant 1 : index
    %c0_33 = arith.constant 0 : index
    %c0_34 = arith.constant 0 : index
    %33 = vector.load %arg8[%c1_32, %c0_33, %c0_34] : memref<3x1x32xf32, #tpu.memory_space<vmem>>, vector<1x1x32xf32>
    %34 = vector.shape_cast %33 : vector<1x1x32xf32> to vector<1x32xf32>
    %35 = vector.broadcast %34 : vector<1x32xf32> to vector<8x32xf32>
    %36 = arith.addf %32, %35 : vector<8x32xf32>
    %c2_35 = arith.constant 2 : index
    %c0_36 = arith.constant 0 : index
    %c0_37 = arith.constant 0 : index
    %37 = vector.load %arg6[%c2_35, %c0_36, %c0_37] : memref<3x32x32xf32, #tpu.memory_space<vmem>>, vector<1x32x32xf32>
    %38 = vector.shape_cast %37 : vector<1x32x32xf32> to vector<32x32xf32>
    %cst_38 = arith.constant dense<0.000000e+00> : vector<8x32xf32>
    %39 = tpu.matmul %1, %38, %cst_38 {dimension_numbers = #tpu.dot_dimension_numbers<[1], [0], [0], [1], [0, 0, 1, 1], [], []>} : vector<8x32xf32>, vector<32x32xf32>, vector<8x32xf32> -> vector<8x32xf32>
    %c2_39 = arith.constant 2 : index
    %c0_40 = arith.constant 0 : index
    %c0_41 = arith.constant 0 : index
    %40 = vector.load %arg8[%c2_39, %c0_40, %c0_41] : memref<3x1x32xf32, #tpu.memory_space<vmem>>, vector<1x1x32xf32>
    %41 = vector.shape_cast %40 : vector<1x1x32xf32> to vector<1x32xf32>
    %42 = vector.broadcast %41 : vector<1x32xf32> to vector<8x32xf32>
    %43 = arith.addf %39, %42 : vector<8x32xf32>
    %44 = arith.addf %8, %29 : vector<8x32xf32>
    %cst_42 = arith.constant 5.000000e-01 : f32
    %45 = vector.broadcast %cst_42 : f32 to vector<8x32xf32>
    %46 = arith.mulf %45, %44 : vector<8x32xf32>
    %47 = math.tanh %46 : vector<8x32xf32>
    %cst_43 = arith.constant 1.000000e+00 : f32
    %48 = vector.broadcast %cst_43 : f32 to vector<8x32xf32>
    %49 = arith.addf %47, %48 : vector<8x32xf32>
    %cst_44 = arith.constant 5.000000e-01 : f32
    %50 = vector.broadcast %cst_44 : f32 to vector<8x32xf32>
    %51 = arith.mulf %50, %49 : vector<8x32xf32>
    %52 = arith.addf %15, %36 : vector<8x32xf32>
    %cst_45 = arith.constant 5.000000e-01 : f32
    %53 = vector.broadcast %cst_45 : f32 to vector<8x32xf32>
    %54 = arith.mulf %53, %52 : vector<8x32xf32>
    %55 = math.tanh %54 : vector<8x32xf32>
    %cst_46 = arith.constant 1.000000e+00 : f32
    %56 = vector.broadcast %cst_46 : f32 to vector<8x32xf32>
    %57 = arith.addf %55, %56 : vector<8x32xf32>
    %cst_47 = arith.constant 5.000000e-01 : f32
    %58 = vector.broadcast %cst_47 : f32 to vector<8x32xf32>
    %59 = arith.mulf %58, %57 : vector<8x32xf32>
    %60 = arith.mulf %51, %43 : vector<8x32xf32>
    %61 = arith.addf %22, %60 : vector<8x32xf32>
    %62 = math.tanh %61 : vector<8x32xf32>
    %cst_48 = arith.constant 1.000000e+00 : f32
    %63 = vector.broadcast %cst_48 : f32 to vector<8x32xf32>
    %64 = arith.subf %63, %59 : vector<8x32xf32>
    %65 = arith.mulf %64, %62 : vector<8x32xf32>
    %66 = arith.mulf %59, %1 : vector<8x32xf32>
    %67 = arith.addf %65, %66 : vector<8x32xf32>
    %c0_49 = arith.constant 0 : index
    %c0_50 = arith.constant 0 : index
    %68 = vector.load %arg14[%c0_49, %c0_50] : memref<8x32xf32, #tpu.memory_space<vmem>>, vector<8x32xf32>
    tpu.vector_store %arg14[%c0_49, %c0_50], %67 {strides = array<i32>} : memref<8x32xf32, #tpu.memory_space<vmem>>, vector<8x32xf32>,
    %c0_51 = arith.constant 0 : index
    %c0_52 = arith.constant 0 : index
    %c0_53 = arith.constant 0 : index
    %69 = vector.load %arg1[%c0_51, %c0_52, %c0_53] : memref<8x16x32xf32, #tpu.memory_space<vmem>>, vector<8x16x32xf32>
    %c0_54 = arith.constant 0 : index
    %c0_55 = arith.constant 0 : index
    %c0_56 = arith.constant 0 : index
    %70 = vector.load %arg2[%c0_54, %c0_55, %c0_56] : memref<8x16x32xf32, #tpu.memory_space<vmem>>, vector<8x16x32xf32>
    %71 = vector.shape_cast %69 : vector<8x16x32xf32> to vector<128x32xf32>
    %72 = vector.shape_cast %70 : vector<8x16x32xf32> to vector<128x32xf32>
    %c0_57 = arith.constant 0 : index
    %c0_58 = arith.constant 0 : index
    %c0_59 = arith.constant 0 : index
    %73 = vector.load %arg9[%c0_57, %c0_58, %c0_59] : memref<3x32x32xf32, #tpu.memory_space<vmem>>, vector<1x32x32xf32>
    %74 = vector.shape_cast %73 : vector<1x32x32xf32> to vector<32x32xf32>
    %cst_60 = arith.constant dense<0.000000e+00> : vector<128x32xf32>
    %75 = tpu.matmul %71, %74, %cst_60 {dimension_numbers = #tpu.dot_dimension_numbers<[1], [0], [0], [1], [0, 0, 1, 1], [], []>} : vector<128x32xf32>, vector<32x32xf32>, vector<128x32xf32> -> vector<128x32xf32>
    %c1_61 = arith.constant 1 : index
    %c0_62 = arith.constant 0 : index
    %c0_63 = arith.constant 0 : index
    %76 = vector.load %arg9[%c1_61, %c0_62, %c0_63] : memref<3x32x32xf32, #tpu.memory_space<vmem>>, vector<1x32x32xf32>
    %77 = vector.shape_cast %76 : vector<1x32x32xf32> to vector<32x32xf32>
    %cst_64 = arith.constant dense<0.000000e+00> : vector<128x32xf32>
    %78 = tpu.matmul %72, %77, %cst_64 {dimension_numbers = #tpu.dot_dimension_numbers<[1], [0], [0], [1], [0, 0, 1, 1], [], []>} : vector<128x32xf32>, vector<32x32xf32>, vector<128x32xf32> -> vector<128x32xf32>
    %79 = arith.addf %75, %78 : vector<128x32xf32>
    %c2_65 = arith.constant 2 : index
    %c0_66 = arith.constant 0 : index
    %c0_67 = arith.constant 0 : index
    %80 = vector.load %arg9[%c2_65, %c0_66, %c0_67] : memref<3x32x32xf32, #tpu.memory_space<vmem>>, vector<1x32x32xf32>
    %81 = vector.shape_cast %80 : vector<1x32x32xf32> to vector<32x32xf32>
    %cst_68 = arith.constant dense<0.000000e+00> : vector<8x32xf32>
    %82 = tpu.matmul %67, %81, %cst_68 {dimension_numbers = #tpu.dot_dimension_numbers<[1], [0], [0], [1], [0, 0, 1, 1], [], []>} : vector<8x32xf32>, vector<32x32xf32>, vector<8x32xf32> -> vector<8x32xf32>
    %83 = vector.shape_cast %79 : vector<128x32xf32> to vector<8x16x32xf32>
    %84 = vector.shape_cast %82 : vector<8x32xf32> to vector<8x1x32xf32>
    %85 = vector.broadcast %84 : vector<8x1x32xf32> to vector<8x16x32xf32>
    %86 = arith.addf %83, %85 : vector<8x16x32xf32>
    %87 = math.tanh %86 : vector<8x16x32xf32>
    %c0_69 = arith.constant 0 : index
    %c0_70 = arith.constant 0 : index
    %88 = vector.load %arg10[%c0_69, %c0_70] : memref<1x32xf32, #tpu.memory_space<vmem>>, vector<1x32xf32>
    %89 = vector.shape_cast %88 : vector<1x32xf32> to vector<1x1x32xf32>
    %90 = vector.broadcast %89 : vector<1x1x32xf32> to vector<8x16x32xf32>
    %91 = arith.mulf %87, %90 : vector<8x16x32xf32>
    %cst_71 = arith.constant dense<0.000000e+00> : vector<8x16xf32>
    %92 = vector.multi_reduction <add>, %91, %cst_71 [2] : vector<8x16x32xf32> to vector<8x16xf32>
    %93 = tpu.iota {dimensions = array<i32: 1>} : vector<8x16xi32>
    %c10_i32 = arith.constant 10 : i32
    %94 = vector.broadcast %c10_i32 : i32 to vector<8x16xi32>
    %95 = arith.cmpi slt, %93, %94 : vector<8x16xi32>
    %cst_72 = arith.constant 0xFF800000 : f32
    %96 = vector.broadcast %cst_72 : f32 to vector<8x16xf32>
    %97 = arith.select %95, %92, %96 : vector<8x16xi1>, vector<8x16xf32>
    %cst_73 = arith.constant dense<0xFF800000> : vector<8xf32>
    %98 = vector.multi_reduction <maximumf>, %97, %cst_73 [1] : vector<8x16xf32> to vector<8xf32>
    %99 = vector.shape_cast %98 : vector<8xf32> to vector<8x1xf32>
    %100 = vector.broadcast %99 : vector<8x1xf32> to vector<8x16xf32>
    %101 = arith.subf %97, %100 : vector<8x16xf32>
    %102 = math.exp %101 : vector<8x16xf32>
    %cst_74 = arith.constant dense<0.000000e+00> : vector<8xf32>
    %103 = vector.multi_reduction <add>, %102, %cst_74 [1] : vector<8x16xf32> to vector<8xf32>
    %104 = vector.shape_cast %103 : vector<8xf32> to vector<8x1xf32>
    %105 = tpu.reciprocal %104 : vector<8x1xf32> -> vector<8x1xf32>
    %106 = vector.broadcast %105 : vector<8x1xf32> to vector<8x16xf32>
    %107 = arith.mulf %102, %106 : vector<8x16xf32>
    %108 = vector.shape_cast %107 : vector<8x16xf32> to vector<8x16x1xf32>
    %109 = vector.broadcast %108 : vector<8x16x1xf32> to vector<8x16x32xf32>
    %110 = arith.mulf %109, %69 : vector<8x16x32xf32>
    %cst_75 = arith.constant dense<0.000000e+00> : vector<8x32xf32>
    %111 = vector.multi_reduction <add>, %110, %cst_75 [1] : vector<8x16x32xf32> to vector<8x32xf32>
    %c1_76 = arith.constant 1 : index
    %c0_77 = arith.constant 0 : index
    %c0_78 = arith.constant 0 : index
    %112 = vector.load %arg11[%c1_76, %c0_77, %c0_78] : memref<2x32x32xf32, #tpu.memory_space<vmem>>, vector<1x32x32xf32>
    %113 = vector.shape_cast %112 : vector<1x32x32xf32> to vector<32x32xf32>
    %cst_79 = arith.constant dense<0.000000e+00> : vector<8x32xf32>
    %114 = tpu.matmul %111, %113, %cst_79 {dimension_numbers = #tpu.dot_dimension_numbers<[1], [0], [0], [1], [0, 0, 1, 1], [], []>} : vector<8x32xf32>, vector<32x32xf32>, vector<8x32xf32> -> vector<8x32xf32>
    %c0_80 = arith.constant 0 : index
    %c0_81 = arith.constant 0 : index
    %c0_82 = arith.constant 0 : index
    %115 = vector.load %arg11[%c0_80, %c0_81, %c0_82] : memref<2x32x32xf32, #tpu.memory_space<vmem>>, vector<1x32x32xf32>
    %116 = vector.shape_cast %115 : vector<1x32x32xf32> to vector<32x32xf32>
    %cst_83 = arith.constant dense<0.000000e+00> : vector<128x32xf32>
    %117 = tpu.matmul %71, %116, %cst_83 {dimension_numbers = #tpu.dot_dimension_numbers<[1], [0], [0], [1], [0, 0, 1, 1], [], []>} : vector<128x32xf32>, vector<32x32xf32>, vector<128x32xf32> -> vector<128x32xf32>
    %118 = vector.shape_cast %117 : vector<128x32xf32> to vector<8x16x32xf32>
    %119 = vector.shape_cast %114 : vector<8x32xf32> to vector<8x1x32xf32>
    %120 = vector.broadcast %119 : vector<8x1x32xf32> to vector<8x16x32xf32>
    %121 = arith.addf %118, %120 : vector<8x16x32xf32>
    %122 = math.tanh %121 : vector<8x16x32xf32>
    %c0_84 = arith.constant 0 : index
    %c0_85 = arith.constant 0 : index
    %123 = vector.load %arg12[%c0_84, %c0_85] : memref<1x32xf32, #tpu.memory_space<vmem>>, vector<1x32xf32>
    %124 = vector.shape_cast %123 : vector<1x32xf32> to vector<1x1x32xf32>
    %125 = vector.broadcast %124 : vector<1x1x32xf32> to vector<8x16x32xf32>
    %126 = arith.mulf %122, %125 : vector<8x16x32xf32>
    %cst_86 = arith.constant dense<0.000000e+00> : vector<8x16xf32>
    %127 = vector.multi_reduction <add>, %126, %cst_86 [2] : vector<8x16x32xf32> to vector<8x16xf32>
    %c0_87 = arith.constant 0 : index
    %c0_88 = arith.constant 0 : index
    %128 = vector.load %arg13[%c0_87, %c0_88] : memref<8x16xf32, #tpu.memory_space<vmem>>, vector<8x16xf32>
    tpu.vector_store %arg13[%c0_87, %c0_88], %127 {strides = array<i32>} : memref<8x16xf32, #tpu.memory_space<vmem>>, vector<8x16xf32>,
    return
  }
  func.func @transform_0(%arg0: i32) -> (i32, i32, i32) {
    %c0_i32 = arith.constant 0 : i32
    %c0_i32_0 = arith.constant 0 : i32
    %c0_i32_1 = arith.constant 0 : i32
    return %arg0, %c0_i32, %c0_i32_0 : i32, i32, i32
  }
  func.func @transform_1(%arg0: i32) -> (i32, i32, i32) {
    %c0_i32 = arith.constant 0 : i32
    %c0_i32_0 = arith.constant 0 : i32
    %c0_i32_1 = arith.constant 0 : i32
    return %arg0, %c0_i32, %c0_i32_0 : i32, i32, i32
  }
  func.func @transform_2(%arg0: i32) -> (i32, i32) {
    %c0_i32 = arith.constant 0 : i32
    %c0_i32_0 = arith.constant 0 : i32
    return %arg0, %c0_i32 : i32, i32
  }
  func.func @transform_3(%arg0: i32) -> (i32, i32) {
    %c0_i32 = arith.constant 0 : i32
    %c0_i32_0 = arith.constant 0 : i32
    return %arg0, %c0_i32 : i32, i32
  }
  func.func @transform_4(%arg0: i32) -> (i32, i32, i32) {
    %c0_i32 = arith.constant 0 : i32
    %c0_i32_0 = arith.constant 0 : i32
    %c0_i32_1 = arith.constant 0 : i32
    %c0_i32_2 = arith.constant 0 : i32
    return %c0_i32, %c0_i32_0, %c0_i32_1 : i32, i32, i32
  }
  func.func @transform_5(%arg0: i32) -> (i32, i32, i32) {
    %c0_i32 = arith.constant 0 : i32
    %c0_i32_0 = arith.constant 0 : i32
    %c0_i32_1 = arith.constant 0 : i32
    %c0_i32_2 = arith.constant 0 : i32
    return %c0_i32, %c0_i32_0, %c0_i32_1 : i32, i32, i32
  }
  func.func @transform_6(%arg0: i32) -> (i32, i32, i32) {
    %c0_i32 = arith.constant 0 : i32
    %c0_i32_0 = arith.constant 0 : i32
    %c0_i32_1 = arith.constant 0 : i32
    %c0_i32_2 = arith.constant 0 : i32
    return %c0_i32, %c0_i32_0, %c0_i32_1 : i32, i32, i32
  }
  func.func @transform_7(%arg0: i32) -> (i32, i32, i32) {
    %c0_i32 = arith.constant 0 : i32
    %c0_i32_0 = arith.constant 0 : i32
    %c0_i32_1 = arith.constant 0 : i32
    %c0_i32_2 = arith.constant 0 : i32
    return %c0_i32, %c0_i32_0, %c0_i32_1 : i32, i32, i32
  }
  func.func @transform_8(%arg0: i32) -> (i32, i32, i32) {
    %c0_i32 = arith.constant 0 : i32
    %c0_i32_0 = arith.constant 0 : i32
    %c0_i32_1 = arith.constant 0 : i32
    %c0_i32_2 = arith.constant 0 : i32
    return %c0_i32, %c0_i32_0, %c0_i32_1 : i32, i32, i32
  }
  func.func @transform_9(%arg0: i32) -> (i32, i32) {
    %c0_i32 = arith.constant 0 : i32
    %c0_i32_0 = arith.constant 0 : i32
    %c0_i32_1 = arith.constant 0 : i32
    return %c0_i32, %c0_i32_0 : i32, i32
  }
  func.func @transform_10(%arg0: i32) -> (i32, i32, i32) {
    %c0_i32 = arith.constant 0 : i32
    %c0_i32_0 = arith.constant 0 : i32
    %c0_i32_1 = arith.constant 0 : i32
    %c0_i32_2 = arith.constant 0 : i32
    return %c0_i32, %c0_i32_0, %c0_i32_1 : i32, i32, i32
  }
  func.func @transform_11(%arg0: i32) -> (i32, i32) {
    %c0_i32 = arith.constant 0 : i32
    %c0_i32_0 = arith.constant 0 : i32
    %c0_i32_1 = arith.constant 0 : i32
    return %c0_i32, %c0_i32_0 : i32, i32
  }
  func.func @transform_12(%arg0: i32) -> (i32, i32) {
    %c0_i32 = arith.constant 0 : i32
    %c0_i32_0 = arith.constant 0 : i32
    return %arg0, %c0_i32 : i32, i32
  }
  func.func @transform_13(%arg0: i32) -> (i32, i32) {
    %c0_i32 = arith.constant 0 : i32
    %c0_i32_0 = arith.constant 0 : i32
    return %arg0, %c0_i32 : i32, i32
  }
}

</mosaic_0001>

<bundles_post_ra>
// kernel: pointer_forward.1
= control target key start
LH: loop header
LB: loop body
LE: loop exit
PB: predicated region body
PF: predicated region fallthrough
CT: control target
= control target key end

     0   :  { %v2651_v0 = vmov 0.0|0.0   ;;  %vm2652_vm0 = vmmov 0   ;;  %v2653_v8 = vmov 0.0   ;;  %vm56_vm1 = vcmask 261120   ;;  %s3376_s4 = inlined_call_operand.vmem [shape: f32[3,32,32], index: 4, kind: input, shape index: {}]   ;;  %s3377_s5 = inlined_call_operand.vmem [shape: f32[3,32,32], index: 5, kind: input, shape index: {}]   ;;  %s3378_s2 = inlined_call_operand.vmem [shape: f32[8,32], index: 2, kind: input, shape index: {}]   ;;  %s3379_s8 = inlined_call_operand.vmem [shape: f32[3,32,32], index: 8, kind: input, shape index: {}]   ;;  %s3380_s3 = inlined_call_operand.vmem [shape: f32[8,32], index: 3, kind: input, shape index: {}]   ;;  %s3381_s1 = inlined_call_operand.vmem [shape: f32[8,16,32], index: 1, kind: input, shape index: {}]   ;;  %s3382_s0 = inlined_call_operand.vmem [shape: f32[8,16,32], index: 0, kind: input, shape index: {}]   ;;  %s3383_s6 = inlined_call_operand.vmem [shape: f32[3,1,32], index: 6, kind: input, shape index: {}]   ;;  %s3384_s7 = inlined_call_operand.vmem [shape: f32[3,1,32], index: 7, kind: input, shape index: {}]   ;;  %s3385_s13 = inlined_call_operand.vmem [shape: f32[8,32], index: 13, kind: output, shape index: {1}]   ;;  %s3386_s9 = inlined_call_operand.vmem [shape: f32[1,32], index: 9, kind: input, shape index: {}]   ;;  %s3387_s10 = inlined_call_operand.vmem [shape: f32[2,32,32], index: 10, kind: input, shape index: {}]   ;;  %s3388_s11 = inlined_call_operand.vmem [shape: f32[1,32], index: 11, kind: input, shape index: {}]   ;;  %s3389_s12 = inlined_call_operand.vmem [shape: f32[8,16], index: 12, kind: output, shape index: {0}]  }
   0x1   :  { %2478 = vmatprep.subr.bf16.mxu1 %v2651_v0  ;;  %2490 = vmatprep.subr.bf16.mxu0 %v2651_v0  ;;  %v45_v1 = vld [vmem:[%s3376_s4] sm:$0xff]  ;;  %v46_v2 = vld [vmem:[%s3376_s4 + $0x8] sm:$0xff]  ;;  %v47_v6 = vld [vmem:[%s3376_s4 + $0x10] sm:$0xff]  ;;  %vm1290_vm2 = vcmask 130112   ;;  %vm1355_vm3 = vcmask 1041409   ;;  %vm1357_vm4 = vcmask 1042434  }
   0x2   :  { %v2107_v3 = vld [vmem:[%s3376_s4 + $0x40] sm:$0xff]  ;;  %v2479_v4 = vpack.c.bf16 %v46_v2, %v45_v1  ;;  %v2108_v5 = vld [vmem:[%s3376_s4 + $0x48] sm:$0xff]  ;;  %v48_v7 = vld [vmem:[%s3376_s4 + $0x18] sm:$0xff]  ;;  %2324 = vmatprep.mubr.msk.f32.mxu0 %vm2652_vm0, %v2653_v8  ;;  %2302 = vmatprep.mubr.msk.f32.mxu1 %vm2652_vm0, %v2653_v8  ;;  %vm1359_vm5 = vcmask 1043459   ;;  %vm1361_vm6 = vcmask 1044484   ;;  %vm1363_vm7 = vcmask 1045509  }
   0x3   :  { %v2491_v9 = vpack.c.bf16 %v2108_v5, %v2107_v3  ;;  %v2109_v10 = vld [vmem:[%s3376_s4 + $0x50] sm:$0xff]  ;;  %v2110_v11 = vld [vmem:[%s3376_s4 + $0x58] sm:$0xff]  ;;  %v2482_v12 = vpack.c.bf16 %v48_v7, %v47_v6  ;;  %v2100_v14 = vld [vmem:[%s3376_s4 + $0x20] sm:$0xff]  ;;  %vm1365_vm8 = vcmask 1046534   ;;  %vm1367_vm9 = vcmask 1047559  }
   0x4   :  { %2480 = vmatpush3.bf16.msra.mxu1 %v2479_v4  ;;  %v2494_v13 = vpack.c.bf16 %v2110_v11, %v2109_v10  ;;  %v2101_v15 = vld [vmem:[%s3376_s4 + $0x28] sm:$0xff]  ;;  %v296_v16 = vld [vmem:[%s3377_s5] sm:$0xff]  ;;  %v2102_v21 = vld [vmem:[%s3376_s4 + $0x30] sm:$0xff]  ;;  %vm1371_vm11 = vcmask 130048  }
   0x5   :  { %2492 = vmatpush3.bf16.msra.mxu0 %v2491_v9  ;;  %2481 = vmatprep.subr.bf16.mxu1 %v2651_v0  ;;  %v297_v17 = vld [vmem:[%s3377_s5 + $0x8] sm:$0xff]  ;;  %v43_v18 = vld [vmem:[%s3378_s2] sm:$0xff]  ;;  %v2485_v19 = vpack.c.bf16 %v2101_v15, %v2100_v14  ;;  %v2103_v22 = vld [vmem:[%s3376_s4 + $0x38] sm:$0xff] }
   0x6   :  { %2493 = vmatprep.subr.bf16.mxu0 %v2651_v0  ;;  %v2497_v20 = vpack.c.bf16 %v297_v17, %v296_v16  ;;  %v298_v23 = vld [vmem:[%s3377_s5 + $0x10] sm:$0xff]  ;;  %v299_v24 = vld [vmem:[%s3377_s5 + $0x18] sm:$0xff]  ;;  %v2130_v25 = vld [vmem:[%s3379_s8 + $0x20] sm:$0xff]  ;;  %v2488_v27 = vpack.c.bf16 %v2103_v22, %v2102_v21 }
   0x7   :  { %v2131_v26 = vld [vmem:[%s3379_s8 + $0x28] sm:$0xff]  ;;  %v2500_v28 = vpack.c.bf16 %v299_v24, %v298_v23  ;;  %v2116_v29 = vld [vmem:[%s3377_s5 + $0x20] sm:$0xff]  ;;  %v2132_v33 = vld [vmem:[%s3379_s8 + $0x30] sm:$0xff] }
   0x8   :  { %2483 = vmatpush3.bf16.msra.mxu1 %v2482_v12  ;;  %v2117_v30 = vld [vmem:[%s3377_s5 + $0x28] sm:$0xff]  ;;  %v2514_v31 = vpack.c.bf16 %v2131_v26, %v2130_v25  ;;  %v2133_v34 = vld [vmem:[%s3379_s8 + $0x38] sm:$0xff]  ;;  %v2815_v35 = vld [vmem:[%s3380_s3] sm:$0xff] }
   0x9   :  { %2495 = vmatpush3.bf16.msra.mxu0 %v2494_v13  ;;  %2484 = vmatprep.subr.bf16.mxu1 %v2651_v0  ;;  %v2503_v32 = vpack.c.bf16 %v2117_v30, %v2116_v29  ;;  %v2118_v36 = vld [vmem:[%s3377_s5 + $0x30] sm:$0xff]  ;;  %v2119_v37 = vld [vmem:[%s3377_s5 + $0x38] sm:$0xff]  ;;  %v2518_v38 = vpack.c.bf16 %v2133_v34, %v2132_v33  ;;  %v580_v39 = vld [vmem:[%s3381_s1] sm:$0xff] }
   0xa   :  { %2496 = vmatprep.subr.bf16.mxu0 %v2651_v0  ;;  %v2506_v40 = vpack.c.bf16 %v2119_v37, %v2118_v36  ;;  %v2123_v41 = vld [vmem:[%s3377_s5 + $0x40] sm:$0xff]  ;;  %v2124_v42 = vld [vmem:[%s3377_s5 + $0x48] sm:$0xff]  ;;  %v2125_v44 = vld [vmem:[%s3377_s5 + $0x50] sm:$0xff] }
   0xb   :  { %2303 = vmatmul.mubr.msk.f32.vlgmr.msra.gmra.mrb[0].mxu1 %vm56_vm1, %v43_v18  ;;  %v2509_v43 = vpack.c.bf16 %v2124_v42, %v2123_v41  ;;  %v2126_v45 = vld [vmem:[%s3377_s5 + $0x58] sm:$0xff]  ;;  %v581_v46 = vld [vmem:[%s3381_s1 + $0x8] sm:$0xff]  ;;  %v582_v47 = vld [vmem:[%s3381_s1 + $0x10] sm:$0xff] }
   0xc   :  { %2325 = vmatmul.mubr.msk.f32.vlgmr.msra.gmra.mrb[0].mxu0 %vm56_vm1, %v43_v18  ;;  %2486 = vmatpush3.bf16.msra.mxu1 %v2485_v19  ;;  %v2512_v48 = vpack.c.bf16 %v2126_v45, %v2125_v44  ;;  %v583_v49 = vld [vmem:[%s3381_s1 + $0x18] sm:$0xff]  ;;  %v584_v50 = vld [vmem:[%s3381_s1 + $0x20] sm:$0xff]  ;;  %v585_v51 = vld [vmem:[%s3381_s1 + $0x28] sm:$0xff] }
   0xd   :  { %2498 = vmatpush3.bf16.msra.mxu0 %v2497_v20  ;;  %2487 = vmatprep.subr.bf16.mxu1 %v2651_v0  ;;  %v586_v52 = vld [vmem:[%s3381_s1 + $0x30] sm:$0xff]  ;;  %v587_v53 = vld [vmem:[%s3381_s1 + $0x38] sm:$0xff]  ;;  %v588_v54 = vld [vmem:[%s3381_s1 + $0x40] sm:$0xff] }
   0xe   :  { %2499 = vmatprep.subr.bf16.mxu0 %v2651_v0  ;;  %2313 = vmatprep.mubr.msk.f32.mxu1 %vm2652_vm0, %v2653_v8  ;;  %v589_v55 = vld [vmem:[%s3381_s1 + $0x48] sm:$0xff]  ;;  %v590_v56 = vld [vmem:[%s3381_s1 + $0x50] sm:$0xff]  ;;  %v591_v57 = vld [vmem:[%s3381_s1 + $0x58] sm:$0xff] }
   0xf   :  { %2335 = vmatprep.mubr.msk.f32.mxu0 %vm2652_vm0, %v2653_v8  ;;  %v596_v58 = vld [vmem:[%s3379_s8] sm:$0xff]  ;;  %v597_v59 = vld [vmem:[%s3379_s8 + $0x8] sm:$0xff]  ;;  %v598_v63 = vld [vmem:[%s3379_s8 + $0x10] sm:$0xff] }
  0x10   :  { %2489 = vmatpush3.bf16.msra.mxu1 %v2488_v27  ;;  %v592_v60 = vld [vmem:[%s3381_s1 + $0x60] sm:$0xff]  ;;  %v2522_v61 = vpack.c.bf16 %v597_v59, %v596_v58  ;;  %v593_v62 = vld [vmem:[%s3381_s1 + $0x68] sm:$0xff]  ;;  %v599_v1 = vld [vmem:[%s3379_s8 + $0x18] sm:$0xff] }
  0x11   :  { %2501 = vmatpush3.bf16.msra.mxu0 %v2500_v28  ;;  %2502 = vmatprep.subr.bf16.mxu1 %v2651_v0  ;;  %v594_v2 = vld [vmem:[%s3381_s1 + $0x70] sm:$0xff]  ;;  %v2526_v3 = vpack.c.bf16 %v599_v1, %v598_v63  ;;  %v595_v4 = vld [vmem:[%s3381_s1 + $0x78] sm:$0xff]  ;;  %v2932_v5 = vld [vmem:[%s3382_s0] sm:$0xff] }
  0x12   :  { %2515 = vmatprep.subr.bf16.mxu0 %v2514_v31  ;;  %v2939_v6 = vld [vmem:[%s3382_s0 + $0x8] sm:$0xff]  ;;  %v2946_v7 = vld [vmem:[%s3382_s0 + $0x10] sm:$0xff]  ;;  %v2953_v9 = vld [vmem:[%s3382_s0 + $0x18] sm:$0xff] }
  0x13   :  { %2314 = vmatmul.mubr.msk.f32.vlgmr.msra.gmra.mrb[2].mxu1 %vm56_vm1, %v43_v18  ;;  %v2960_v10 = vld [vmem:[%s3382_s0 + $0x20] sm:$0xff]  ;;  %v2967_v11 = vld [vmem:[%s3382_s0 + $0x28] sm:$0xff]  ;;  %v2974_v12 = vld [vmem:[%s3382_s0 + $0x30] sm:$0xff] }
  0x14   :  { %2336 = vmatmul.mubr.msk.f32.vlgmr.msra.gmra.mrb[2].mxu0 %vm56_vm1, %v2815_v35  ;;  %2504 = vmatpush3.bf16.msra.mxu1 %v2503_v32  ;;  %v2981_v13 = vld [vmem:[%s3382_s0 + $0x38] sm:$0xff]  ;;  %v2988_v14 = vld [vmem:[%s3382_s0 + $0x40] sm:$0xff]  ;;  %v2995_v15 = vld [vmem:[%s3382_s0 + $0x48] sm:$0xff] }
  0x15   :  { %2505 = vmatprep.subr.bf16.mxu1 %v2651_v0  ;;  %2346 = vmatprep.mubr.msk.f32.mxu1 %vm2652_vm0, %v2653_v8  ;;  %v3002_v16 = vld [vmem:[%s3382_s0 + $0x50] sm:$0xff]  ;;  %v3007_v17 = vld [vmem:[%s3382_s0 + $0x58] sm:$0xff]  ;;  %v3012_v18 = vld [vmem:[%s3382_s0 + $0x60] sm:$0xff] }
  0x16   :  { %2517 = vmatpush3.bf16.msra.mxu0 %v2514_v31  ;;  %2368 = vmatprep.mubr.msk.f32.mxu0 %vm56_vm1, %v580_v39  ;;  %v2166_v19 = vld [vmem:[%s3379_s8 + $0x40] sm:$0xff]  ;;  %v2167_v20 = vld [vmem:[%s3379_s8 + $0x48] sm:$0xff]  ;;  %v2168_v22 = vld [vmem:[%s3379_s8 + $0x50] sm:$0xff] }
  0x17   :  { %2519 = vmatprep.subr.bf16.mxu0 %v2518_v38  ;;  %v2531_v21 = vpack.c.bf16 %v2167_v20, %v2166_v19  ;;  %v2169_v23 = vld [vmem:[%s3379_s8 + $0x58] sm:$0xff]  ;;  %v3035_v24 = vld [vmem:[%s3382_s0 + $0x68] sm:$0xff]  ;;  %v3040_v25 = vld [vmem:[%s3382_s0 + $0x70] sm:$0xff] }
  0x18   :  { %2507 = vmatpush3.bf16.msra.mxu1 %v2506_v40  ;;  %v2534_v26 = vpack.c.bf16 %v2169_v23, %v2168_v22  ;;  %v3050_v27 = vld [vmem:[%s3382_s0 + $0x78] sm:$0xff]  ;;  %v2098_v30 = vld [vmem:[%s3383_s6] ss:$0 sm:$0xff]  ;;  %v2105_v40 = vld [vmem:[%s3383_s6 + $0x1] ss:$0 sm:$0xff] }
  0x19   :  { %2508 = vmatprep.subr.bf16.mxu1 %v2651_v0  ;;  %v2114_v34 = vld [vmem:[%s3384_s7] ss:$0 sm:$0xff]  ;;  %v2121_v41 = vld [vmem:[%s3384_s7 + $0x1] ss:$0 sm:$0xff] }
  0x1a   :  { %2521 = vmatpush3.bf16.msra.mxu0 %v2518_v38 }
  0x1b   :  { %2347 = vmatmul.mubr.msk.f32.vlgmr.msra.gmra.mrb[2].mxu1 %vm56_vm1, %v2815_v35  ;;  %2523 = vmatprep.subr.bf16.mxu0 %v2522_v61 }
  0x1c   :  { %2510 = vmatpush3.bf16.msra.mxu1 %v2509_v43  ;;  %2357 = vmatprep.mubr.msk.f32.mxu1 %vm2652_vm0, %v2653_v8  ;;  %v2553_v43 = vadd.f32 %v2121_v41, %v2105_v40 }
  0x1d   :  { %2511 = vmatprep.subr.bf16.mxu1 %v2651_v0  ;;  %2369 = vmatmul.mubr.msk.f32.vlgmr.msra.gmra.mrb[4].mxu0 %vm56_vm1, %v581_v46 }
  0x1e   :  { %2371 = vmatprep.mubr.msk.f32.mxu0 %vm56_vm1, %v582_v47  ;;  %2525 = vmatpush3.bf16.msra.mxu0 %v2522_v61 }
  0x1f   :  { %2527 = vmatprep.subr.bf16.mxu0 %v2526_v3 }
  0x20   :  { %2513 = vmatpush3.bf16.msra.mxu1 %v2512_v48  ;;  %v2128_v48 = vld [vmem:[%s3384_s7 + $0x2] ss:$0 sm:$0xff] }
  0x21   :  { %2372 = vmatmul.mubr.msk.f32.gmra.mrb[6].mxu0 %vm56_vm1, %v583_v49  ;;  %2530 = vmatprep.subr.bf16.mxu1 %v2651_v0 }
  0x22   :  { %2374 = vmatprep.mubr.msk.f32.mxu0 %vm56_vm1, %v584_v50  ;;  %2529 = vmatpush3.bf16.msra.mxu0 %v2526_v3 }
  0x23   :  { %2358 = vmatmul.mubr.msk.f32.vlgmr.msra.gmra.mrb[4].mxu1 %vm56_vm1, %v2815_v35 }
  0x24   :  { %2432 = vmatprep.mubr.msk.f32.mxu1 %vm2652_vm0, %v2653_v8  ;;  %2532 = vmatpush3.bf16.msra.mxu1 %v2531_v21 }
  0x25   :  { %2375 = vmatmul.mubr.msk.f32.gmra.mrb[8].mxu0 %vm56_vm1, %v585_v51  ;;  %2533 = vmatprep.subr.bf16.mxu1 %v2651_v0 }
  0x26   :  { %2377 = vmatprep.mubr.msk.f32.mxu0 %vm56_vm1, %v586_v52 }
  0x28   :  { %2535 = vmatpush3.bf16.msra.mxu1 %v2534_v26 }
  0x29   :  { %2378 = vmatmul.mubr.msk.f32.gmra.mrb[10].mxu0 %vm56_vm1, %v587_v53  ;;  %2536 = vmatprep.subr.bf16.mxu1 %v2651_v0 }
  0x2a   :  { %2380 = vmatprep.mubr.msk.f32.mxu0 %vm56_vm1, %v588_v54  ;;  %v2112_v54 = vld [vmem:[%s3383_s6 + $0x2] ss:$0 sm:$0xff] }
  0x2d   :  { %2381 = vmatmul.mubr.msk.f32.gmra.mrb[12].mxu0 %vm56_vm1, %v589_v55 }
  0x2e   :  { %2383 = vmatprep.mubr.msk.f32.mxu0 %vm56_vm1, %v590_v56 }
  0x31   :  { %2384 = vmatmul.mubr.msk.f32.gmra.mrb[14].mxu0 %vm56_vm1, %v591_v57 }
  0x32   :  { %2386 = vmatprep.mubr.msk.f32.mxu0 %vm56_vm1, %v592_v60 }
  0x35   :  { %2387 = vmatmul.mubr.msk.f32.gmra.mrb[16].mxu0 %vm56_vm1, %v593_v62 }
  0x36   :  { %2389 = vmatprep.mubr.msk.f32.mxu0 %vm56_vm1, %v594_v2 }
  0x39   :  { %2390 = vmatmul.mubr.msk.f32.gmra.mrb[18].mxu0 %vm56_vm1, %v595_v4 }
  0x3a   :  { %2400 = vmatprep.mubr.msk.f32.mxu0 %vm56_vm1, %v2932_v5 }
  0x3d   :  { %2401 = vmatmul.mubr.msk.f32.vlgmr.msra.gmra.mrb[4].mxu0 %vm56_vm1, %v2939_v6 }
  0x3e   :  { %2403 = vmatprep.mubr.msk.f32.mxu0 %vm56_vm1, %v2946_v7 }
  0x41   :  { %2404 = vmatmul.mubr.msk.f32.gmra.mrb[6].mxu0 %vm56_vm1, %v2953_v9 }
  0x42   :  { %2406 = vmatprep.mubr.msk.f32.mxu0 %vm56_vm1, %v2960_v10 }
  0x45   :  { %2407 = vmatmul.mubr.msk.f32.gmra.mrb[8].mxu0 %vm56_vm1, %v2967_v11 }
  0x46   :  { %2409 = vmatprep.mubr.msk.f32.mxu0 %vm56_vm1, %v2974_v12 }
  0x49   :  { %2410 = vmatmul.mubr.msk.f32.gmra.mrb[10].mxu0 %vm56_vm1, %v2981_v13 }
  0x4a   :  { %2412 = vmatprep.mubr.msk.f32.mxu0 %vm56_vm1, %v2988_v14 }
  0x4d   :  { %2413 = vmatmul.mubr.msk.f32.gmra.mrb[12].mxu0 %vm56_vm1, %v2995_v15 }
  0x4e   :  { %2415 = vmatprep.mubr.msk.f32.mxu0 %vm56_vm1, %v3002_v16 }
  0x51   :  { %2416 = vmatmul.mubr.msk.f32.gmra.mrb[14].mxu0 %vm56_vm1, %v3007_v17 }
  0x52   :  { %2418 = vmatprep.mubr.msk.f32.mxu0 %vm56_vm1, %v3012_v18 }
  0x55   :  { %2419 = vmatmul.mubr.msk.f32.gmra.mrb[16].mxu0 %vm56_vm1, %v3035_v24 }
  0x56   :  { %2421 = vmatprep.mubr.msk.f32.mxu0 %vm56_vm1, %v3040_v25 }
  0x59   :  { %2422 = vmatmul.mubr.msk.f32.gmra.mrb[18].mxu0 %vm56_vm1, %v3050_v27 }
  0xde   :  { %v126_v28 = vpop.f32.mrb[0].mxu1 }
  0xdf   :  { %v292_v29 = vpop.f32.mrb[0].mxu0  ;;  %v2304_v31 = vpop.f32.mrb[1].mxu1  ;;  %v127_v33 = vadd.f32 %v2098_v30, %v126_v28 }
  0xe0   :  { %v2326_v32 = vpop.f32.mrb[1].mxu0  ;;  %v293_v56 = vadd.f32 %v2112_v54, %v292_v29 }
  0xe1   :  { %v2551_v36 = vadd.f32 %v2114_v34, %v127_v33 }
  0xe7   :  { %v376_v37 = vpop.f32.mrb[2].mxu0 }
  0xe8   :  { %v2552_v38 = vadd.f32 %v2551_v36, %v376_v37  ;;  %v2337_v39 = vpop.f32.mrb[3].mxu0  ;;  %v2654_v37 = vmov 1966171168  }
  0xe9   :  { %v1074_v39 = vlaneseq }
  0xea   :  { %v547_v42 = vmul.f32 0.5, %v2552_v38  ;;  %v1072_v38 = vunpack.c.l.s4 %v2654_v37 }
  0xeb   :  { %v3082_v40 = vshrl.u32 %v1074_v39, 7 }
  0xec   :  { %2577 = vtanh.f32 %v547_v42 }
  0xee   :  { %v459_v44 = vpop.f32.mrb[2].mxu1 }
  0xef   :  { %v2554_v45 = vadd.f32 %v2553_v43, %v459_v44  ;;  %v2348_v46 = vpop.f32.mrb[3].mxu1 }
  0xf0   :  { %v3089_v46 = vsub.s32 0, %v3082_v40 }
  0xf1   :  { %v552_v47 = vmul.f32 0.5, %v2554_v45 }
  0xf3   :  { %2579 = vtanh.f32 %v552_v47 }
  0xf6   :  { %v2578_v49 = vpop.eup %2577  ;;  %v542_v50 = vpop.f32.mrb[4].mxu1 }
  0xf7   :  { %v549_v51 = vadd.f32 1.0, %v2578_v49  ;;  %v543_v52 = vadd.f32 %v2128_v48, %v542_v50  ;;  %v2359_v53 = vpop.f32.mrb[5].mxu1 }
  0xf9   :  { %v550_v55 = vmul.f32 0.5, %v549_v51 }
  0xfb   :  { %v556_v57 = vmul.f32 %v550_v55, %v543_v52 }
  0xfd   :  { %v2580_v58 = vpop.eup %2579  ;;  %v557_v59 = vadd.f32 %v556_v57, %v293_v56 }
  0xfe   :  { %v554_v60 = vadd.f32 1.0, %v2580_v58 }
  0xff   :  { %2581 = vtanh.f32 %v557_v59 }
 0x100   :  { %v555_v61 = vmul.f32 0.5, %v554_v60 }
 0x102   :  { %v559_v62 = vsub.f32 1.0, %v555_v61  ;;  %v561_v1 = vmul.f32 %v555_v61, %v2815_v35 }
 0x109   :  { %v2582_v63 = vpop.eup %2581 }
 0x10a   :  { %v560_v2 = vmul.f32 %v2582_v63, %v559_v62 }
 0x10c   :  { %v562_v3 = vadd.f32 %v561_v1, %v560_v2 }
 0x10e   :  { %563 = vst.msk [vmem:[%s3385_s13] sm:$0xff] %vm56_vm1, %v562_v3  ;;  %2433 = vmatmul.mubr.msk.f32.vlgmr.msra.gmra.mrb[6].mxu1 %vm56_vm1, %v562_v3 }
 0x10f   :  { %2443 = vmatprep.mubr.msk.f32.mxu1 %vm2652_vm0, %v2653_v8  ;;  %v1073_v8 = vunpack.c.0.s8 %v1072_v38 }
 0x110   :  { %v2402_v4 = vpop.f32.mrb[4].mxu0 }
 0x111   :  { %v912_v19 = vpop.f32.mrb[5].mxu0  ;;  %v3085_v41 = vsub.s32 %v1073_v8, %v3082_v40 }
 0x114   :  { %v2405_v20 = vpop.f32.mrb[6].mxu0 }
 0x115   :  { %v922_v21 = vpop.f32.mrb[7].mxu0 }
 0x118   :  { %v2408_v22 = vpop.f32.mrb[8].mxu0 }
 0x119   :  { %v932_v23 = vpop.f32.mrb[9].mxu0 }
 0x11c   :  { %v2411_v26 = vpop.f32.mrb[10].mxu0 }
 0x11d   :  { %v942_v35 = vpop.f32.mrb[11].mxu0 }
 0x120   :  { %v2414_v28 = vpop.f32.mrb[12].mxu0 }
 0x121   :  { %v952_v29 = vpop.f32.mrb[13].mxu0 }
 0x124   :  { %v2417_v30 = vpop.f32.mrb[14].mxu0 }
 0x125   :  { %v962_v31 = vpop.f32.mrb[15].mxu0 }
 0x128   :  { %v2420_v32 = vpop.f32.mrb[16].mxu0 }
 0x129   :  { %v972_v33 = vpop.f32.mrb[17].mxu0 }
 0x12c   :  { %v2423_v34 = vpop.f32.mrb[18].mxu0 }
 0x12d   :  { %v982_v36 = vpop.f32.mrb[19].mxu0 }
 0x1e1   :  { %v1065_v42 = vpop.f32.mrb[6].mxu1 }
 0x1e2   :  { %v1070_v43 = vcombine.high %v1065_v42, %v1065_v42  ;;  %v1077_v44 = vrot.slane %v1065_v42, %v3085_v41  ;;  %v2434_v45 = vpop.f32.mrb[7].mxu1 }
 0x1e4   :  { %v1084_v47 = vrot.slane %v1070_v43, %v3085_v41  ;;  %v1085_v48 = vcombine.high %v1077_v44, %v1077_v44  ;;  %v1093_v49 = vrot.slane %v1077_v44, %v3085_v41 }
 0x1e6   :  { %v1086_v50 = vcombine.high %v1084_v47, %v1084_v47  ;;  %v1100_v51 = vrot.slane %v1084_v47, %v3085_v41  ;;  %v1107_v52 = vrot.slane %v1085_v48, %v3085_v41  ;;  %v1115_v53 = vcombine.high %v1093_v49, %v1093_v49 }
 0x1e7   :  { %v1122_v54 = vrot.slane %v1093_v49, %v3089_v46 }
 0x1e8   :  { %v1114_v55 = vrot.slane %v1086_v50, %v3085_v41  ;;  %v1116_v56 = vcombine.high %v1100_v51, %v1100_v51  ;;  %v1117_v57 = vcombine.high %v1107_v52, %v1107_v52  ;;  %v1126_v58 = vrot.slane %v1107_v52, %v3089_v46 }
 0x1e9   :  { %v1130_v59 = vrot.slane %v1115_v53, %v3089_v46  ;;  %v1138_v60 = vrot.slane %v1100_v51, %v3089_v46  ;;  %v1159_v61 = vadd.f32 %v1122_v54, %v912_v19  ;;  %v1160_v62 = vadd.f32 %v2402_v4, %v1122_v54 }
 0x1ea   :  { %v1118_v63 = vcombine.high %v1114_v55, %v1114_v55  ;;  %v1134_v1 = vrot.slane %v1117_v57, %v3089_v46  ;;  %v1142_v2 = vrot.slane %v1114_v55, %v3089_v46  ;;  %v1146_v3 = vrot.slane %v1116_v56, %v3089_v46 }
 0x1eb   :  { %v1161_v37 = vadd.f32 %v1126_v58, %v922_v21  ;;  %v1162_v38 = vadd.f32 %v2405_v20, %v1126_v58  ;;  %v1163_v8 = vadd.f32 %v1130_v59, %v932_v23  ;;  %v1164_v42 = vadd.f32 %v2408_v22, %v1130_v59  ;;  %v3107_v20 = vld [vmem:[%s3386_s9] ss:$0 sm:$0xff] }
 0x1ec   :  { %v1150_v43 = vrot.slane %v1118_v63, %v3089_v46  ;;  %v1165_v44 = vadd.f32 %v1134_v1, %v942_v35  ;;  %v1166_v45 = vadd.f32 %v2411_v26, %v1134_v1  ;;  %v1167_v47 = vadd.f32 %v1138_v60, %v952_v29 }
 0x1ed   :  { %v1168_v48 = vadd.f32 %v2414_v28, %v1138_v60  ;;  %v1169_v49 = vadd.f32 %v1142_v2, %v962_v31  ;;  %v1170_v19 = vadd.f32 %v2417_v30, %v1142_v2  ;;  %v1171_v4 = vadd.f32 %v1146_v3, %v972_v33 }
 0x1ee   :  { %v1172_v50 = vadd.f32 %v2420_v32, %v1146_v3  ;;  %v1173_v51 = vadd.f32 %v1150_v43, %v982_v36  ;;  %v1174_v52 = vadd.f32 %v2423_v34, %v1150_v43  ;;  %2583 = vtanh.f32 %v1159_v61 }
 0x1ef   :  { %2585 = vtanh.f32 %v1160_v62 }
 0x1f0   :  { %2587 = vtanh.f32 %v1161_v37 }
 0x1f1   :  { %2589 = vtanh.f32 %v1162_v38 }
 0x1f2   :  { %2591 = vtanh.f32 %v1163_v8 }
 0x1f3   :  { %2593 = vtanh.f32 %v1164_v42 }
 0x1f4   :  { %2595 = vtanh.f32 %v1167_v47 }
 0x1f5   :  { %2597 = vtanh.f32 %v1168_v48 }
 0x1f6   :  { %2599 = vtanh.f32 %v1165_v44 }
 0x1f7   :  { %2601 = vtanh.f32 %v1166_v45 }
 0x1f8   :  { %v2584_v21 = vpop.eup %2583  ;;  %2603 = vtanh.f32 %v1169_v49 }
 0x1f9   :  { %v2586_v22 = vpop.eup %2585  ;;  %v1198_v23 = vmul.f32 %v2584_v21, %v3107_v20  ;;  %2605 = vtanh.f32 %v1170_v19 }
 0x1fa   :  { %v2588_v26 = vpop.eup %2587  ;;  %v1199_v30 = vmul.f32 %v2586_v22, %v3107_v20  ;;  %2607 = vtanh.f32 %v1171_v4 }
 0x1fb   :  { %v2590_v35 = vpop.eup %2589  ;;  %v1214_v28 = vsel %vm56_vm1, %v1198_v23, 0.0  ;;  %v1200_v29 = vmul.f32 %v2588_v26, %v3107_v20  ;;  %2609 = vtanh.f32 %v1172_v50 }
 0x1fc   :  { %v2592_v31 = vpop.eup %2591  ;;  %1215 = vadd.xlane.f32.xlu0 %v1214_v28  ;;  %v1201_v33 = vmul.f32 %v2590_v35, %v3107_v20  ;;  %v1217_v36 = vsel %vm56_vm1, %v1199_v30, 0.0  ;;  %2611 = vtanh.f32 %v1173_v51 }
 0x1fd   :  { %v1220_v32 = vsel %vm56_vm1, %v1200_v29, 0.0  ;;  %v2594_v34 = vpop.eup %2593  ;;  %v1202_v53 = vmul.f32 %v2592_v31, %v3107_v20  ;;  %2613 = vtanh.f32 %v1174_v52 }
 0x1fe   :  { %1221 = vadd.xlane.f32.xlu1 %v1220_v32  ;;  %v2596_v54 = vpop.eup %2595  ;;  %v1223_v55 = vsel %vm56_vm1, %v1201_v33, 0.0  ;;  %v1203_v56 = vmul.f32 %v2594_v34, %v3107_v20 }
 0x1ff   :  { %v2598_v57 = vpop.eup %2597  ;;  %v1226_v58 = vsel %vm56_vm1, %v1202_v53, 0.0  ;;  %v1206_v59 = vmul.f32 %v2596_v54, %v3107_v20 }
 0x200   :  { %1218 = vadd.xlane.f32.xlu0 %v1217_v36  ;;  %v2600_v60 = vpop.eup %2599  ;;  %v1229_v61 = vsel %vm56_vm1, %v1203_v56, 0.0  ;;  %v1207_v62 = vmul.f32 %v2598_v57, %v3107_v20  ;;  %v1263_v36 = vand.u32 127, %v1074_v39 }
 0x201   :  { %v2602_v63 = vpop.eup %2601  ;;  %v1238_v1 = vsel %vm56_vm1, %v1206_v59, 0.0  ;;  %v1204_v2 = vmul.f32 %v2600_v60, %v3107_v20 }
 0x202   :  { %1224 = vadd.xlane.f32.xlu1 %v1223_v55  ;;  %v2604_v3 = vpop.eup %2603  ;;  %v1241_v37 = vsel %vm56_vm1, %v1207_v62, 0.0  ;;  %v1205_v38 = vmul.f32 %v2602_v63, %v3107_v20  ;;  %v1285_v54 = vadd.s32 4294967288, %v1263_v36  ;;  %vm1264_vm10 = vcmp.lt.s32.totalorder %v1263_v36, 10 }
 0x203   :  { %v2606_v8 = vpop.eup %2605  ;;  %v1232_v42 = vsel %vm56_vm1, %v1204_v2, 0.0  ;;  %v1208_v43 = vmul.f32 %v2604_v3, %v3107_v20 }
 0x204   :  { %1227 = vadd.xlane.f32.xlu0 %v1226_v58  ;;  %v2608_v44 = vpop.eup %2607  ;;  %v1235_v45 = vsel %vm56_vm1, %v1205_v38, 0.0  ;;  %v1209_v47 = vmul.f32 %v2606_v8, %v3107_v20  ;;  %v3146_v58 = vsub.s32 %v1263_v36, %v3082_v40 }
 0x205   :  { %v2610_v48 = vpop.eup %2609  ;;  %v1244_v49 = vsel %vm56_vm1, %v1208_v43, 0.0  ;;  %v1210_v19 = vmul.f32 %v2608_v44, %v3107_v20 }
 0x206   :  { %1230 = vadd.xlane.f32.xlu1 %v1229_v61  ;;  %v2612_v4 = vpop.eup %2611  ;;  %v1247_v50 = vsel %vm56_vm1, %v1209_v47, 0.0  ;;  %v1211_v51 = vmul.f32 %v2610_v48, %v3107_v20 }
 0x207   :  { %v2614_v52 = vpop.eup %2613  ;;  %v1250_v21 = vsel %vm56_vm1, %v1210_v19, 0.0  ;;  %v1212_v22 = vmul.f32 %v2612_v4, %v3107_v20 }
 0x208   :  { %1239 = vadd.xlane.f32.xlu0 %v1238_v1  ;;  %v1253_v23 = vsel %vm56_vm1, %v1211_v51, 0.0  ;;  %v1213_v26 = vmul.f32 %v2614_v52, %v3107_v20  ;;  %v3143_v20 = vsub.s32 %v1285_v54, %v3082_v40 }
 0x209   :  { %v1256_v35 = vsel %vm56_vm1, %v1212_v22, 0.0 }
 0x20a   :  { %1242 = vadd.xlane.f32.xlu1 %v1241_v37  ;;  %v1259_v28 = vsel %vm56_vm1, %v1213_v26, 0.0 }
 0x20c   :  { %1233 = vadd.xlane.f32.xlu0 %v1232_v42 }
 0x20e   :  { %1236 = vadd.xlane.f32.xlu1 %v1235_v45 }
 0x210   :  { %1245 = vadd.xlane.f32.xlu0 %v1244_v49 }
 0x212   :  { %1248 = vadd.xlane.f32.xlu1 %v1247_v50 }
 0x214   :  { %1251 = vadd.xlane.f32.xlu0 %v1250_v21 }
 0x216   :  { %1254 = vadd.xlane.f32.xlu1 %v1253_v23 }
 0x218   :  { %1257 = vadd.xlane.f32.xlu0 %v1256_v35 }
 0x21a   :  { %1260 = vadd.xlane.f32.xlu1 %v1259_v28 }
 0x289   :  { %v1216_v29 = vpop.xlane.xlu0 %1215 }
 0x28a   :  { %v1284_v3 = vrot.slane %v1216_v29, %v3146_v58 }
 0x28b   :  { %v1222_v30 = vpop.xlane.xlu1 %1221 }
 0x28c   :  { %v1295_v62 = vrot.slane %v1222_v30, %v3146_v58 }
 0x28d   :  { %v1219_v31 = vpop.xlane.xlu0 %1218 }
 0x28e   :  { %v1289_v39 = vrot.slane %v1219_v31, %v3143_v20 }
 0x28f   :  { %v1225_v32 = vpop.xlane.xlu1 %1224 }
 0x290   :  { %v1299_v59 = vrot.slane %v1225_v32, %v3143_v20  ;;  %v1291_v43 = vsel %vm1290_vm2, %v1289_v39, %v1284_v3 }
 0x291   :  { %v1228_v33 = vpop.xlane.xlu0 %1227 }
 0x292   :  { %v1304_v1 = vrot.slane %v1228_v33, %v3146_v58  ;;  %v1300_v37 = vsel %vm1290_vm2, %v1299_v59, %v1295_v62 }
 0x293   :  { %v1231_v34 = vpop.xlane.xlu1 %1230  ;;  %v1356_v47 = vsel %vm1355_vm3, %v1300_v37, %v1291_v43 }
 0x294   :  { %v1308_v60 = vrot.slane %v1231_v34, %v3143_v20 }
 0x295   :  { %v1240_v53 = vpop.xlane.xlu0 %1239 }
 0x296   :  { %v1309_v8 = vsel %vm1290_vm2, %v1308_v60, %v1304_v1  ;;  %v1322_v51 = vrot.slane %v1240_v53, %v3146_v58  ;;  %v1396_v1 = vsub.s32 1, %v3082_v40 }
 0x297   :  { %v1243_v55 = vpop.xlane.xlu1 %1242  ;;  %v1358_v19 = vsel %vm1357_vm4, %v1309_v8, %v1356_v47  ;;  %v1451_v47 = vsub.s32 6, %v3082_v40 }
 0x298   :  { %v1326_v48 = vrot.slane %v1243_v55, %v3143_v20 }
 0x299   :  { %v1234_v56 = vpop.xlane.xlu0 %1233 }
 0x29a   :  { %v1313_v38 = vrot.slane %v1234_v56, %v3146_v58  ;;  %v1327_v26 = vsel %vm1290_vm2, %v1326_v48, %v1322_v51  ;;  %v2174_v51 = vld [vmem:[%s3387_s10 + $0x30] sm:$0xff] }
 0x29b   :  { %v1237_v57 = vpop.xlane.xlu1 %1236 }
 0x29c   :  { %v1317_v63 = vrot.slane %v1237_v57, %v3143_v20 }
 0x29d   :  { %v1246_v61 = vpop.xlane.xlu0 %1245 }
 0x29e   :  { %v1318_v44 = vsel %vm1290_vm2, %v1317_v63, %v1313_v38  ;;  %v1331_v4 = vrot.slane %v1246_v61, %v3146_v58  ;;  %v1418_v38 = vsub.s32 3, %v3082_v40 }
 0x29f   :  { %v1249_v2 = vpop.xlane.xlu1 %1248  ;;  %v1360_v52 = vsel %vm1359_vm5, %v1318_v44, %v1358_v19  ;;  %v1440_v44 = vsub.s32 5, %v3082_v40 }
 0x2a0   :  { %v1335_v45 = vrot.slane %v1249_v2, %v3143_v20  ;;  %v1362_v31 = vsel %vm1361_vm6, %v1327_v26, %v1360_v52  ;;  %v1407_v2 = vsub.s32 2, %v3082_v40  ;;  %v2175_v52 = vld [vmem:[%s3387_s10 + $0x38] sm:$0xff] }
 0x2a1   :  { %v1252_v42 = vpop.xlane.xlu0 %1251 }
 0x2a2   :  { %v1340_v21 = vrot.slane %v1252_v42, %v3146_v58  ;;  %v1336_v23 = vsel %vm1290_vm2, %v1335_v45, %v1331_v4  ;;  %v1429_v42 = vsub.s32 4, %v3082_v40  ;;  %v2172_v4 = vld [vmem:[%s3387_s10 + $0x20] sm:$0xff] }
 0x2a3   :  { %v1255_v49 = vpop.xlane.xlu1 %1254  ;;  %v1364_v32 = vsel %vm1363_vm7, %v1336_v23, %v1362_v31  ;;  %v2540_v23 = vpack.c.bf16 %v2175_v52, %v2174_v51 }
 0x2a4   :  { %v1344_v50 = vrot.slane %v1255_v49, %v3143_v20  ;;  %v1462_v49 = vsub.s32 7, %v3082_v40 }
 0x2a5   :  { %v1258_v22 = vpop.xlane.xlu0 %1257 }
 0x2a6   :  { %v1345_v35 = vsel %vm1290_vm2, %v1344_v50, %v1340_v21  ;;  %v1349_v29 = vrot.slane %v1258_v22, %v3146_v58  ;;  %v2173_v50 = vld [vmem:[%s3387_s10 + $0x28] sm:$0xff]  ;;  %v1651_v21 = vld [vmem:[%s3387_s10] sm:$0xff] }
 0x2a7   :  { %v1261_v28 = vpop.xlane.xlu1 %1260  ;;  %v1366_v34 = vsel %vm1365_vm8, %v1345_v35, %v1364_v32  ;;  %v2537_v40 = vpack.c.bf16 %v2173_v50, %v2172_v4  ;;  %v1652_v22 = vld [vmem:[%s3387_s10 + $0x8] sm:$0xff] }
 0x2a8   :  { %v1353_v30 = vrot.slane %v1261_v28, %v3143_v20  ;;  %v3208_v26 = vpack.c.bf16 %v1652_v22, %v1651_v21 }
 0x2a9   :  { %2538 = vmatpush3.bf16.msra.mxu1 %v2537_v40 }
 0x2aa   :  { %v1354_v33 = vsel %vm1290_vm2, %v1353_v30, %v1349_v29  ;;  %2539 = vmatprep.subr.bf16.mxu1 %v2651_v0 }
 0x2ab   :  { %v1368_v53 = vsel %vm1367_vm9, %v1354_v33, %v1366_v34 }
 0x2ac   :  { %v1370_v54 = vsel %vm1264_vm10, %v1368_v53, -inf }
 0x2ad   :  { %v1372_v55 = vsel %vm1371_vm11, %v1370_v54, -inf  ;;  %2541 = vmatpush3.bf16.msra.mxu1 %v2540_v23 }
 0x2ae   :  { %1373 = vmax.xlane.f32.xlu0 %v1372_v55  ;;  %2543 = vmatprep.subr.bf16.mxu1 %v3208_v26 }
 0x33b   :  { %v1374_v56 = vpop.xlane.xlu0 %1373 }
 0x33c   :  { %v1375_v57 = vsub.f32 %v1370_v54, %v1374_v56 }
 0x33e   :  { %v1376_v59 = vmul.f32 1.442695, %v1375_v57 }
 0x340   :  { %2615 = vpow2.f32 %v1376_v59 }
 0x34a   :  { %v2616_v60 = vpop.eup %2615 }
 0x34b   :  { %v1378_v36 = vsel %vm1371_vm11, %v2616_v60, 0.0 }
 0x34c   :  { %1379 = vadd.xlane.f32.xlu1 %v1378_v36 }
 0x3d9   :  { %v1380_v61 = vpop.xlane.xlu1 %1379 }
 0x3da   :  { %2617 = vrcp.f32 %v1380_v61 }
 0x3e4   :  { %v2618_v62 = vpop.eup %2617 }
 0x3e5   :  { %v1382_v39 = vmul.f32 %v2618_v62, %v2616_v60 }
 0x3e7   :  { %v1386_v63 = vrot.slane %v1382_v39, %v3089_v46  ;;  %v1397_v3 = vrot.slane %v1382_v39, %v1396_v1  ;;  %v1408_v37 = vrot.slane %v1382_v39, %v1407_v2  ;;  %v1419_v8 = vrot.slane %v1382_v39, %v1418_v38 }
 0x3e8   :  { %v1430_v43 = vrot.slane %v1382_v39, %v1429_v42  ;;  %v1441_v45 = vrot.slane %v1382_v39, %v1440_v44  ;;  %v1452_v48 = vrot.slane %v1382_v39, %v1451_v47  ;;  %v1463_v19 = vrot.slane %v1382_v39, %v1462_v49 }
 0x3e9   :  { %1392 = vbcast.lane.b32.xlu1 %v1386_v63, 264  ;;  %1388 = vbcast.lane.b32.xlu0 %v1386_v63, 256 }
 0x3ed   :  { %1399 = vbcast.lane.b32.xlu1 %v1397_v3, 256  ;;  %1410 = vbcast.lane.b32.xlu0 %v1408_v37, 256 }
 0x3f1   :  { %1403 = vbcast.lane.b32.xlu1 %v1397_v3, 264  ;;  %1421 = vbcast.lane.b32.xlu0 %v1419_v8, 256 }
 0x3f5   :  { %1414 = vbcast.lane.b32.xlu1 %v1408_v37, 264  ;;  %1432 = vbcast.lane.b32.xlu0 %v1430_v43, 256 }
 0x3f9   :  { %1425 = vbcast.lane.b32.xlu1 %v1419_v8, 264  ;;  %1443 = vbcast.lane.b32.xlu0 %v1441_v45, 256 }
 0x3fd   :  { %1436 = vbcast.lane.b32.xlu1 %v1430_v43, 264  ;;  %1454 = vbcast.lane.b32.xlu0 %v1452_v48, 256 }
 0x401   :  { %1447 = vbcast.lane.b32.xlu1 %v1441_v45, 264  ;;  %1465 = vbcast.lane.b32.xlu0 %v1463_v19, 256 }
 0x405   :  { %1458 = vbcast.lane.b32.xlu1 %v1452_v48, 264 }
 0x409   :  { %1469 = vbcast.lane.b32.xlu1 %v1463_v19, 264 }
 0x45b   :  { %v1393_v35 = vpop.permute.xlu1 %1392  ;;  %v1389_v28 = vpop.permute.xlu0 %1388 }
 0x45c   :  { %v1472_v34 = vmul.f32 %v1393_v35, %v2939_v6  ;;  %v1471_v53 = vmul.f32 %v1389_v28, %v2932_v5 }
 0x45e   :  { %v1488_v60 = vsel %vm56_vm1, %v1472_v34, 0.0  ;;  %v1487_v36 = vsel %vm56_vm1, %v1471_v53, 0.0 }
 0x45f   :  { %v1400_v29 = vpop.permute.xlu1 %1399  ;;  %v1411_v30 = vpop.permute.xlu0 %1410  ;;  %v1489_v8 = vadd.f32 %v1488_v60, %v1487_v36 }
 0x460   :  { %v1473_v54 = vmul.f32 %v1400_v29, %v2946_v7  ;;  %v1475_v0 = vmul.f32 %v1411_v30, %v2960_v10 }
 0x461   :  { %v1490_v4 = vrot.slane %v1489_v8, 4 }
 0x462   :  { %v1496_v61 = vsel %vm56_vm1, %v1473_v54, 0.0  ;;  %v1505_v63 = vsel %vm56_vm1, %v1475_v0, 0.0 }
 0x463   :  { %v1404_v31 = vpop.permute.xlu1 %1403  ;;  %v1422_v32 = vpop.permute.xlu0 %1421  ;;  %v1491_v30 = vadd.f32 %v1490_v4, %v1489_v8 }
 0x464   :  { %v1474_v33 = vmul.f32 %v1404_v31, %v2953_v9  ;;  %v1477_v62 = vmul.f32 %v1422_v32, %v2974_v12 }
 0x465   :  { %v1492_v36 = vrot.slane %v1491_v30, 2 }
 0x466   :  { %v1497_v57 = vsel %vm56_vm1, %v1474_v33, 0.0  ;;  %v1514_v42 = vsel %vm56_vm1, %v1477_v62, 0.0 }
 0x467   :  { %v1415_v55 = vpop.permute.xlu1 %1414  ;;  %v1433_v56 = vpop.permute.xlu0 %1432  ;;  %v1498_v1 = vadd.f32 %v1497_v57, %v1496_v61 }
 0x468   :  { %v1476_v59 = vmul.f32 %v1415_v55, %v2967_v11  ;;  %v1479_v43 = vmul.f32 %v1433_v56, %v2988_v14 }
 0x469   :  { %v1499_v45 = vrot.slane %v1498_v1, 4 }
 0x46a   :  { %v1506_v39 = vsel %vm56_vm1, %v1476_v59, 0.0  ;;  %v1523_v40 = vsel %vm56_vm1, %v1479_v43, 0.0 }
 0x46b   :  { %v1426_v2 = vpop.permute.xlu1 %1425  ;;  %v1444_v3 = vpop.permute.xlu0 %1443  ;;  %v1507_v37 = vadd.f32 %v1506_v39, %v1505_v63  ;;  %v1500_v22 = vadd.f32 %v1499_v45, %v1498_v1 }
 0x46c   :  { %v1478_v38 = vmul.f32 %v1426_v2, %v2981_v13  ;;  %v1481_v52 = vmul.f32 %v1444_v3, %v3002_v16 }
 0x46d   :  { %v1508_v49 = vrot.slane %v1507_v37, 4  ;;  %v1501_v54 = vrot.slane %v1500_v22, 2 }
 0x46e   :  { %v1515_v44 = vsel %vm56_vm1, %v1478_v38, 0.0  ;;  %v1532_v33 = vsel %vm56_vm1, %v1481_v52, 0.0 }
 0x46f   :  { %v1516_v47 = vadd.f32 %v1515_v44, %v1514_v42  ;;  %v1437_v48 = vpop.permute.xlu1 %1436  ;;  %v1455_v51 = vpop.permute.xlu0 %1454  ;;  %v1509_v28 = vadd.f32 %v1508_v49, %v1507_v37  ;;  %v1502_v3 = vadd.f32 %v1501_v54, %v1500_v22  ;;  %v1493_v44 = vadd.f32 %v1492_v36, %v1491_v30 }
 0x470   :  { %v1480_v19 = vmul.f32 %v1437_v48, %v2995_v15  ;;  %v1483_v34 = vmul.f32 %v1455_v51, %v3012_v18 }
 0x471   :  { %v1517_v50 = vrot.slane %v1516_v47, 4  ;;  %v1510_v59 = vrot.slane %v1509_v28, 2  ;;  %v1494_v22 = vrot.slane %v1493_v44, 1 }
 0x472   :  { %v1524_v21 = vsel %vm56_vm1, %v1480_v19, 0.0  ;;  %v1541_v63 = vsel %vm56_vm1, %v1483_v34, 0.0 }
 0x473   :  { %v1525_v23 = vadd.f32 %v1524_v21, %v1523_v40  ;;  %v1448_v35 = vpop.permute.xlu1 %1447  ;;  %v1518_v31 = vadd.f32 %v1517_v50, %v1516_v47  ;;  %v1466_v56 = vpop.permute.xlu0 %1465  ;;  %v1511_v42 = vadd.f32 %v1510_v59, %v1509_v28  ;;  %v1503_v50 = vrot.slane %v1502_v3, 1 }
 0x474   :  { %v1482_v29 = vmul.f32 %v1448_v35, %v3007_v17  ;;  %v1485_v1 = vmul.f32 %v1466_v56, %v3040_v25 }
 0x475   :  { %v1526_v32 = vrot.slane %v1525_v23, 4  ;;  %v1519_v61 = vrot.slane %v1518_v31, 2  ;;  %v1512_v21 = vrot.slane %v1511_v42, 1 }
 0x476   :  { %v1533_v53 = vsel %vm56_vm1, %v1482_v29, 0.0  ;;  %v1550_v19 = vsel %vm56_vm1, %v1485_v1, 0.0  ;;  %v1654_v1 = vld [vmem:[%s3387_s10 + $0x18] sm:$0xff] }
 0x477   :  { %v1527_v0 = vadd.f32 %v1526_v32, %v1525_v23  ;;  %v1534_v55 = vadd.f32 %v1533_v53, %v1532_v33  ;;  %v1459_v57 = vpop.permute.xlu1 %1458  ;;  %v1520_v45 = vadd.f32 %v1519_v61, %v1518_v31  ;;  %v1504_v32 = vadd.f32 %v1503_v50, %v1502_v3 }
 0x478   :  { %v1484_v60 = vmul.f32 %v1459_v57, %v3035_v24  ;;  %v1513_v34 = vadd.f32 %v1512_v21, %v1511_v42  ;;  %v1495_v53 = vadd.f32 %v1494_v22, %v1493_v44 }
 0x479   :  { %v1535_v62 = vrot.slane %v1534_v55, 4  ;;  %v1528_v39 = vrot.slane %v1527_v0, 2  ;;  %v1521_v23 = vrot.slane %v1520_v45, 1 }
 0x47a   :  { %v1542_v2 = vsel %vm56_vm1, %v1484_v60, 0.0  ;;  %v1572_v57 = vsel %vm1355_vm3, %v1504_v32, %v1495_v53 }
 0x47b   :  { %v1536_v37 = vadd.f32 %v1535_v62, %v1534_v55  ;;  %v1543_v38 = vadd.f32 %v1542_v2, %v1541_v63  ;;  %v1470_v8 = vpop.permute.xlu1 %1469  ;;  %v1529_v49 = vadd.f32 %v1528_v39, %v1527_v0  ;;  %v1522_v54 = vadd.f32 %v1521_v23, %v1520_v45  ;;  %v1653_v63 = vld [vmem:[%s3387_s10 + $0x10] sm:$0xff] }
 0x47c   :  { %v1486_v43 = vmul.f32 %v1470_v8, %v3050_v27  ;;  %v1573_v36 = vsel %vm1357_vm4, %v1513_v34, %v1572_v57  ;;  %v2546_v8 = vpack.c.bf16 %v1654_v1, %v1653_v63 }
 0x47d   :  { %v1537_v47 = vrot.slane %v1536_v37, 2  ;;  %v1544_v48 = vrot.slane %v1543_v38, 4  ;;  %v1530_v29 = vrot.slane %v1529_v49, 1  ;;  %v1574_v62 = vsel %vm1359_vm5, %v1522_v54, %v1573_v36 }
 0x47e   :  { %v1551_v4 = vsel %vm56_vm1, %v1486_v43, 0.0 }
 0x47f   :  { %v1538_v51 = vadd.f32 %v1537_v47, %v1536_v37  ;;  %v1545_v40 = vadd.f32 %v1544_v48, %v1543_v38  ;;  %v1552_v52 = vadd.f32 %v1551_v4, %v1550_v19  ;;  %v1531_v56 = vadd.f32 %v1530_v29, %v1529_v49 }
 0x481   :  { %v1546_v35 = vrot.slane %v1545_v40, 2  ;;  %v1553_v28 = vrot.slane %v1552_v52, 4  ;;  %v1539_v30 = vrot.slane %v1538_v51, 1  ;;  %v1575_v2 = vsel %vm1361_vm6, %v1531_v56, %v1574_v62 }
 0x483   :  { %v1547_v31 = vadd.f32 %v1546_v35, %v1545_v40  ;;  %v1554_v33 = vadd.f32 %v1553_v28, %v1552_v52  ;;  %v1540_v59 = vadd.f32 %v1539_v30, %v1538_v51  ;;  %v3302_v52 = vld [vmem:[%s3388_s11] ss:$0 sm:$0xff] }
 0x485   :  { %v1548_v0 = vrot.slane %v1547_v31, 1  ;;  %v1555_v55 = vrot.slane %v1554_v33, 2  ;;  %v1576_v37 = vsel %vm1363_vm7, %v1540_v59, %v1575_v2 }
 0x487   :  { %v1556_v60 = vadd.f32 %v1555_v55, %v1554_v33  ;;  %v1549_v61 = vadd.f32 %v1548_v0, %v1547_v31 }
 0x489   :  { %v1557_v39 = vrot.slane %v1556_v60, 1  ;;  %v1577_v38 = vsel %vm1365_vm8, %v1549_v61, %v1576_v37 }
 0x48b   :  { %v1558_v3 = vadd.f32 %v1557_v39, %v1556_v60 }
 0x48d   :  { %v1578_v42 = vsel %vm1367_vm9, %v1558_v3, %v1577_v38 }
 0x48e   :  { %2444 = vmatmul.mubr.msk.f32.vlgmr.msra.gmra.mrb[8].mxu1 %vm56_vm1, %v1578_v42 }
 0x48f   :  { %2545 = vmatpush3.bf16.msra.mxu1 %v3208_v26  ;;  %2454 = vmatprep.mubr.msk.f32.mxu1 %vm56_vm1, %v2932_v5 }
 0x490   :  { %2547 = vmatprep.subr.bf16.mxu1 %v2546_v8 }
 0x493   :  { %2549 = vmatpush3.bf16.msra.mxu1 %v2546_v8 }
 0x496   :  { %2455 = vmatmul.mubr.msk.f32.vlgmr.msra.gmra.mrb[10].mxu1 %vm56_vm1, %v2939_v6 }
 0x497   :  { %2457 = vmatprep.mubr.msk.f32.mxu1 %vm56_vm1, %v2946_v7 }
 0x49a   :  { %2458 = vmatmul.mubr.msk.f32.gmra.mrb[12].mxu1 %vm56_vm1, %v2953_v9 }
 0x49b   :  { %2460 = vmatprep.mubr.msk.f32.mxu1 %vm56_vm1, %v2960_v10 }
 0x49e   :  { %2461 = vmatmul.mubr.msk.f32.gmra.mrb[14].mxu1 %vm56_vm1, %v2967_v11 }
 0x49f   :  { %2463 = vmatprep.mubr.msk.f32.mxu1 %vm56_vm1, %v2974_v12 }
 0x4a2   :  { %2464 = vmatmul.mubr.msk.f32.gmra.mrb[16].mxu1 %vm56_vm1, %v2981_v13 }
 0x4a3   :  { %2466 = vmatprep.mubr.msk.f32.mxu1 %vm56_vm1, %v2988_v14 }
 0x4a6   :  { %2467 = vmatmul.mubr.msk.f32.gmra.mrb[18].mxu1 %vm56_vm1, %v2995_v15 }
 0x4a7   :  { %2469 = vmatprep.mubr.msk.f32.mxu1 %vm56_vm1, %v3002_v16 }
 0x4aa   :  { %2470 = vmatmul.mubr.msk.f32.gmra.mrb[20].mxu1 %vm56_vm1, %v3007_v17 }
 0x4ab   :  { %2472 = vmatprep.mubr.msk.f32.mxu1 %vm56_vm1, %v3012_v18 }
 0x4ae   :  { %2473 = vmatmul.mubr.msk.f32.gmra.mrb[22].mxu1 %vm56_vm1, %v3035_v24 }
 0x4af   :  { %2475 = vmatprep.mubr.msk.f32.mxu1 %vm56_vm1, %v3040_v25 }
 0x4b2   :  { %2476 = vmatmul.mubr.msk.f32.gmra.mrb[24].mxu1 %vm56_vm1, %v3050_v27 }
 0x561   :  { %v1647_v5 = vpop.f32.mrb[8].mxu1 }
 0x562   :  { %v1808_v6 = vrot.slane %v1647_v5, %v3085_v41  ;;  %v2445_v7 = vpop.f32.mrb[9].mxu1  ;;  %v1801_v17 = vcombine.high %v1647_v5, %v1647_v5 }
 0x564   :  { %v1816_v9 = vcombine.high %v1808_v6, %v1808_v6  ;;  %v1824_v10 = vrot.slane %v1808_v6, %v3085_v41  ;;  %v1815_v44 = vrot.slane %v1801_v17, %v3085_v41 }
 0x566   :  { %v1853_v11 = vrot.slane %v1824_v10, %v3089_v46  ;;  %v1838_v12 = vrot.slane %v1816_v9, %v3085_v41  ;;  %v1846_v24 = vcombine.high %v1824_v10, %v1824_v10  ;;  %v1817_v50 = vcombine.high %v1815_v44, %v1815_v44 }
 0x567   :  { %v1831_v40 = vrot.slane %v1815_v44, %v3085_v41 }
 0x568   :  { %v1857_v18 = vrot.slane %v1838_v12, %v3089_v46  ;;  %v1861_v45 = vrot.slane %v1846_v24, %v3089_v46  ;;  %v1848_v47 = vcombine.high %v1838_v12, %v1838_v12  ;;  %v1845_v33 = vrot.slane %v1817_v50, %v3085_v41 }
 0x569   :  { %v2456_v13 = vpop.f32.mrb[10].mxu1  ;;  %v1869_v30 = vrot.slane %v1831_v40, %v3089_v46  ;;  %v1847_v61 = vcombine.high %v1831_v40, %v1831_v40 }
 0x56a   :  { %v1891_v14 = vadd.f32 %v2456_v13, %v1853_v11  ;;  %v1721_v15 = vpop.f32.mrb[11].mxu1  ;;  %v1865_v51 = vrot.slane %v1848_v47, %v3089_v46  ;;  %v1873_v36 = vrot.slane %v1845_v33, %v3089_v46  ;;  %v1849_v42 = vcombine.high %v1845_v33, %v1845_v33 }
 0x56b   :  { %v1890_v16 = vadd.f32 %v1853_v11, %v1721_v15  ;;  %v1877_v8 = vrot.slane %v1847_v61, %v3089_v46 }
 0x56c   :  { %2619 = vtanh.f32 %v1891_v14 }
 0x56d   :  { %2621 = vtanh.f32 %v1890_v16  ;;  %v2459_v25 = vpop.f32.mrb[12].mxu1  ;;  %v1881_v16 = vrot.slane %v1849_v42, %v3089_v46 }
 0x56e   :  { %v1893_v27 = vadd.f32 %v2459_v25, %v1857_v18  ;;  %v1731_v26 = vpop.f32.mrb[13].mxu1 }
 0x56f   :  { %v1892_v43 = vadd.f32 %v1857_v18, %v1731_v26 }
 0x570   :  { %2623 = vtanh.f32 %v1893_v27 }
 0x571   :  { %2625 = vtanh.f32 %v1892_v43  ;;  %v2462_v48 = vpop.f32.mrb[14].mxu1 }
 0x572   :  { %v1895_v49 = vadd.f32 %v2462_v48, %v1861_v45  ;;  %v1741_v19 = vpop.f32.mrb[15].mxu1 }
 0x573   :  { %v1894_v4 = vadd.f32 %v1861_v45, %v1741_v19 }
 0x574   :  { %2627 = vtanh.f32 %v1895_v49 }
 0x575   :  { %2629 = vtanh.f32 %v1894_v4  ;;  %v2465_v21 = vpop.f32.mrb[16].mxu1 }
 0x576   :  { %v2620_v22 = vpop.eup %2619  ;;  %v1897_v23 = vadd.f32 %v2465_v21, %v1865_v51  ;;  %v1751_v35 = vpop.f32.mrb[17].mxu1 }
 0x577   :  { %v2622_v28 = vpop.eup %2621  ;;  %v1896_v29 = vadd.f32 %v1865_v51, %v1751_v35  ;;  %v1930_v32 = vmul.f32 %v2620_v22, %v3302_v52 }
 0x578   :  { %2631 = vtanh.f32 %v1897_v23  ;;  %v1929_v31 = vmul.f32 %v2622_v28, %v3302_v52 }
 0x579   :  { %2633 = vtanh.f32 %v1896_v29  ;;  %v2468_v34 = vpop.f32.mrb[18].mxu1  ;;  %v1948_v53 = vsel %vm56_vm1, %v1930_v32, 0.0 }
 0x57a   :  { %v2624_v54 = vpop.eup %2623  ;;  %v1899_v0 = vadd.f32 %v2468_v34, %v1869_v30  ;;  %1949 = vadd.xlane.f32.xlu1 %v1948_v53  ;;  %v1761_v55 = vpop.f32.mrb[19].mxu1  ;;  %v1945_v56 = vsel %vm56_vm1, %v1929_v31, 0.0 }
 0x57b   :  { %v2626_v57 = vpop.eup %2625  ;;  %v1898_v59 = vadd.f32 %v1869_v30, %v1761_v55  ;;  %1946 = vadd.xlane.f32.xlu0 %v1945_v56  ;;  %v1932_v60 = vmul.f32 %v2624_v54, %v3302_v52 }
 0x57c   :  { %2635 = vtanh.f32 %v1899_v0  ;;  %v1931_v2 = vmul.f32 %v2626_v57, %v3302_v52 }
 0x57d   :  { %2637 = vtanh.f32 %v1898_v59  ;;  %v2471_v41 = vpop.f32.mrb[20].mxu1  ;;  %v1954_v62 = vsel %vm56_vm1, %v1932_v60, 0.0 }
 0x57e   :  { %v2628_v39 = vpop.eup %2627  ;;  %v1901_v63 = vadd.f32 %v2471_v41, %v1873_v36  ;;  %v1771_v1 = vpop.f32.mrb[21].mxu1  ;;  %v1951_v11 = vsel %vm56_vm1, %v1931_v2, 0.0 }
 0x57f   :  { %v2630_v3 = vpop.eup %2629  ;;  %v1900_v37 = vadd.f32 %v1873_v36, %v1771_v1  ;;  %1955 = vadd.xlane.f32.xlu0 %v1954_v62  ;;  %v1934_v38 = vmul.f32 %v2628_v39, %v3302_v52 }
 0x580   :  { %2639 = vtanh.f32 %v1901_v63  ;;  %v1933_v12 = vmul.f32 %v2630_v3, %v3302_v52 }
 0x581   :  { %2641 = vtanh.f32 %v1900_v37  ;;  %v2474_v5 = vpop.f32.mrb[22].mxu1  ;;  %v1960_v6 = vsel %vm56_vm1, %v1934_v38, 0.0 }
 0x582   :  { %v2632_v7 = vpop.eup %2631  ;;  %v1903_v9 = vadd.f32 %v2474_v5, %v1877_v8  ;;  %1961 = vadd.xlane.f32.xlu1 %v1960_v6  ;;  %v1781_v10 = vpop.f32.mrb[23].mxu1  ;;  %v1957_v26 = vsel %vm56_vm1, %v1933_v12, 0.0 }
 0x583   :  { %v2634_v13 = vpop.eup %2633  ;;  %v1902_v14 = vadd.f32 %v1877_v8, %v1781_v10  ;;  %1952 = vadd.xlane.f32.xlu0 %v1951_v11  ;;  %v1936_v15 = vmul.f32 %v2632_v7, %v3302_v52 }
 0x584   :  { %2643 = vtanh.f32 %v1903_v9  ;;  %v1935_v43 = vmul.f32 %v2634_v13, %v3302_v52 }
 0x585   :  { %2645 = vtanh.f32 %v1902_v14  ;;  %v2477_v17 = vpop.f32.mrb[24].mxu1  ;;  %v1966_v18 = vsel %vm56_vm1, %v1936_v15, 0.0 }
 0x586   :  { %v2636_v24 = vpop.eup %2635  ;;  %v1905_v25 = vadd.f32 %v2477_v17, %v1881_v16  ;;  %1967 = vadd.xlane.f32.xlu1 %v1966_v18  ;;  %v1791_v27 = vpop.f32.mrb[25].mxu1  ;;  %v1963_v49 = vsel %vm56_vm1, %v1935_v43, 0.0 }
 0x587   :  { %v2638_v44 = vpop.eup %2637  ;;  %v1904_v45 = vadd.f32 %v1881_v16, %v1791_v27  ;;  %1958 = vadd.xlane.f32.xlu0 %v1957_v26  ;;  %v1938_v47 = vmul.f32 %v2636_v24, %v3302_v52 }
 0x588   :  { %2647 = vtanh.f32 %v1905_v25  ;;  %v1937_v19 = vmul.f32 %v2638_v44, %v3302_v52 }
 0x589   :  { %2649 = vtanh.f32 %v1904_v45  ;;  %v1972_v46 = vsel %vm56_vm1, %v1938_v47, 0.0 }
 0x58a   :  { %v2640_v48 = vpop.eup %2639  ;;  %1973 = vadd.xlane.f32.xlu1 %v1972_v46  ;;  %v1969_v21 = vsel %vm56_vm1, %v1937_v19, 0.0 }
 0x58b   :  { %v2642_v4 = vpop.eup %2641  ;;  %1964 = vadd.xlane.f32.xlu0 %v1963_v49  ;;  %v1940_v50 = vmul.f32 %v2640_v48, %v3302_v52 }
 0x58c   :  { %v1939_v22 = vmul.f32 %v2642_v4, %v3302_v52 }
 0x58d   :  { %v1978_v51 = vsel %vm56_vm1, %v1940_v50, 0.0 }
 0x58e   :  { %v2644_v40 = vpop.eup %2643  ;;  %1979 = vadd.xlane.f32.xlu1 %v1978_v51  ;;  %v1975_v32 = vsel %vm56_vm1, %v1939_v22, 0.0 }
 0x58f   :  { %v2646_v23 = vpop.eup %2645  ;;  %1970 = vadd.xlane.f32.xlu0 %v1969_v21  ;;  %v1942_v35 = vmul.f32 %v2644_v40, %v3302_v52 }
 0x590   :  { %v1941_v30 = vmul.f32 %v2646_v23, %v3302_v52 }
 0x591   :  { %v1984_v28 = vsel %vm56_vm1, %v1942_v35, 0.0 }
 0x592   :  { %v2648_v29 = vpop.eup %2647  ;;  %1985 = vadd.xlane.f32.xlu1 %v1984_v28  ;;  %v1981_v53 = vsel %vm56_vm1, %v1941_v30, 0.0 }
 0x593   :  { %v2650_v31 = vpop.eup %2649  ;;  %1976 = vadd.xlane.f32.xlu0 %v1975_v32  ;;  %v1944_v33 = vmul.f32 %v2648_v29, %v3302_v52 }
 0x594   :  { %v1943_v54 = vmul.f32 %v2650_v31, %v3302_v52 }
 0x595   :  { %v1990_v34 = vsel %vm56_vm1, %v1944_v33, 0.0 }
 0x596   :  { %1991 = vadd.xlane.f32.xlu1 %v1990_v34  ;;  %v1987_v0 = vsel %vm56_vm1, %v1943_v54, 0.0 }
 0x597   :  { %1982 = vadd.xlane.f32.xlu0 %v1981_v53 }
 0x59b   :  { %1988 = vadd.xlane.f32.xlu0 %v1987_v0 }
 0x607   :  { %v1950_v56 = vpop.xlane.xlu1 %1949 }
 0x608   :  { %v1947_v55 = vpop.xlane.xlu0 %1946  ;;  %v2016_v37 = vrot.slane %v1950_v56, %v3143_v20 }
 0x609   :  { %v2012_v38 = vrot.slane %v1947_v55, %v3146_v58 }
 0x60b   :  { %v2017_v14 = vsel %vm1290_vm2, %v2016_v37, %v2012_v38 }
 0x60c   :  { %v1956_v57 = vpop.xlane.xlu0 %1955 }
 0x60d   :  { %v2025_v8 = vrot.slane %v1956_v57, %v3143_v20 }
 0x60f   :  { %v1962_v59 = vpop.xlane.xlu1 %1961 }
 0x610   :  { %v1953_v60 = vpop.xlane.xlu0 %1952  ;;  %v2034_v5 = vrot.slane %v1962_v59, %v3143_v20 }
 0x611   :  { %v2021_v1 = vrot.slane %v1953_v60, %v3146_v58 }
 0x613   :  { %v1968_v36 = vpop.xlane.xlu1 %1967  ;;  %v2026_v7 = vsel %vm1290_vm2, %v2025_v8, %v2021_v1 }
 0x614   :  { %v1959_v61 = vpop.xlane.xlu0 %1958  ;;  %v2043_v9 = vrot.slane %v1968_v36, %v3143_v20  ;;  %v2081_v18 = vsel %vm1355_vm3, %v2026_v7, %v2017_v14 }
 0x615   :  { %v2030_v2 = vrot.slane %v1959_v61, %v3146_v58 }
 0x617   :  { %v1974_v41 = vpop.xlane.xlu1 %1973  ;;  %v2035_v11 = vsel %vm1290_vm2, %v2034_v5, %v2030_v2 }
 0x618   :  { %v1965_v62 = vpop.xlane.xlu0 %1964  ;;  %v2052_v12 = vrot.slane %v1974_v41, %v3143_v20  ;;  %v2082_v26 = vsel %vm1357_vm4, %v2035_v11, %v2081_v18 }
 0x619   :  { %v2039_v42 = vrot.slane %v1965_v62, %v3146_v58 }
 0x61b   :  { %v1980_v39 = vpop.xlane.xlu1 %1979  ;;  %v2044_v15 = vsel %vm1290_vm2, %v2043_v9, %v2039_v42 }
 0x61c   :  { %v1971_v63 = vpop.xlane.xlu0 %1970  ;;  %v2061_v16 = vrot.slane %v1980_v39, %v3143_v20  ;;  %v2083_v44 = vsel %vm1359_vm5, %v2044_v15, %v2082_v26 }
 0x61d   :  { %v2048_v6 = vrot.slane %v1971_v63, %v3146_v58 }
 0x61f   :  { %v1986_v52 = vpop.xlane.xlu1 %1985  ;;  %v2053_v24 = vsel %vm1290_vm2, %v2052_v12, %v2048_v6 }
 0x620   :  { %v1977_v3 = vpop.xlane.xlu0 %1976  ;;  %v2070_v25 = vrot.slane %v1986_v52, %v3143_v20  ;;  %v2084_v46 = vsel %vm1361_vm6, %v2053_v24, %v2083_v44 }
 0x621   :  { %v2057_v10 = vrot.slane %v1977_v3, %v3146_v58 }
 0x623   :  { %v1992_v27 = vpop.xlane.xlu1 %1991  ;;  %v2062_v43 = vsel %vm1290_vm2, %v2061_v16, %v2057_v10 }
 0x624   :  { %v1983_v13 = vpop.xlane.xlu0 %1982  ;;  %v2079_v48 = vrot.slane %v1992_v27, %v3143_v20  ;;  %v2085_v19 = vsel %vm1363_vm7, %v2062_v43, %v2084_v46 }
 0x625   :  { %v2066_v17 = vrot.slane %v1983_v13, %v3146_v58 }
 0x627   :  { %v2071_v45 = vsel %vm1290_vm2, %v2070_v25, %v2066_v17 }
 0x628   :  { %v1989_v47 = vpop.xlane.xlu0 %1988  ;;  %v2086_v4 = vsel %vm1365_vm8, %v2071_v45, %v2085_v19 }
 0x629   :  { %v2075_v49 = vrot.slane %v1989_v47, %v3146_v58 }
 0x62b   :  { %v2080_v50 = vsel %vm1290_vm2, %v2079_v48, %v2075_v49 }
 0x62c   :  { %v2087_v51 = vsel %vm1367_vm9, %v2080_v50, %v2086_v4 }
 0x62d   :  { %2089 = vst.msk [vmem:[%s3389_s12] sm:$0xff] %vm1371_vm11, %v2087_v51 }

</bundles_post_ra>
